<compile_context>
chip_gen: v7x
topology: tpu7x:2x2x1
jax: 0.10.0
libtpu: 0.0.40
codegen_flags: <defaults>
</compile_context>

<pallas_src>
import jax
import jax.numpy as jnp
import numpy as np
from jax.experimental import pallas as pl
from jax.experimental.pallas import tpu as pltpu


def make_lstm_kernel(num_layers: int, seq_len: int, batch: int, hidden_dim: int):
    """Builds a Pallas kernel closed over static layer count / seq length / batch."""
    H = hidden_dim
    T = seq_len
    B = batch

    def kernel(*refs):
        # refs layout:
        #   x_ref,                                   (T*B, D)
        #   [wih_0, whh_0, b_0, ..., wih_{L-1}, whh_{L-1}, b_{L-1}],
        #   fcw_ref, fcb_ref,                        (H, O_pad), (1, O_pad)
        #   out_ref,                                 (B, O_pad)
        #   pre_ref, seq_ref                         scratch: (T*B,4H), (T*B,H)
        x_ref = refs[0]
        layer_refs = refs[1:1 + 3 * num_layers]
        fcw_ref = refs[1 + 3 * num_layers]
        fcb_ref = refs[2 + 3 * num_layers]
        out_ref = refs[3 + 3 * num_layers]
        pre_ref, seq_ref = refs[4 + 3 * num_layers:]

        h_last = None
        for l in range(num_layers):
            wih_ref = layer_refs[3 * l + 0]
            whh_ref = layer_refs[3 * l + 1]
            b_ref = layer_refs[3 * l + 2]
            src_ref = x_ref if l == 0 else seq_ref

            # Hoisted input projection: one (T*B, D_in) @ (D_in, 4H) matmul
            # with the bias folded in.  Removes T tiny matmuls and the bias
            # broadcast from the serialized recurrence.
            pre_ref[...] = (
                jnp.dot(src_ref[...], wih_ref[...],
                        preferred_element_type=jnp.float32)
                + b_ref[...]
            )

            # Hoist the recurrent weight load out of the time loop.
            whh = whh_ref[...]                              # (H, 4H)

            # h/c carried as values (vregs); time loop fully unrolled (T static).
            h = jnp.zeros((B, H), jnp.float32)
            c = jnp.zeros((B, H), jnp.float32)
            for t in range(T):
                gates = (
                    pre_ref[pl.ds(t * B, B), :]
                    + jnp.dot(h, whh, preferred_element_type=jnp.float32)
                )                                           # (B, 4H)
                # One sigmoid pass + one tanh pass over the full 4H-lane vreg,
                # then static per-gate slices (PyTorch order i, f, g, o).
                sig = jax.nn.sigmoid(gates)
                th = jnp.tanh(gates)
                i_g = sig[:, 0 * H:1 * H]
                f_g = sig[:, 1 * H:2 * H]
                g_g = th[:, 2 * H:3 * H]
                o_g = sig[:, 3 * H:4 * H]
                c = f_g * c + i_g * g_g
                h = o_g * jnp.tanh(c)
                if l < num_layers - 1:
                    # Only intermediate layers need the full output sequence.
                    seq_ref[pl.ds(t * B, B), :] = h
            h_last = h

        # fc on the last time-step hidden state of the top layer.
        # fc weights are lane-padded so this store is unmasked / lane-dense.
        out_ref[...] = (
            jnp.dot(h_last, fcw_ref[...], preferred_element_type=jnp.float32)
            + fcb_ref[...]
        )

    return kernel


def lstm_model_forward(x, params):
    """x: (B, T, D) batch-first, like the PyTorch module. Returns (B, O)."""
    B, T, D = x.shape
    H = params["layers"][0][1].shape[1]          # w_hh is (4H, H) -> H = shape[1]
    L = len(params["layers"])
    O = params["fc_w"].shape[0]
    O_pad = ((O + 127) // 128) * 128             # lane-dense output width

    # ---- glue: layout + weight prep (plain JAX, outside the kernel) ----
    x_flat = jnp.transpose(x, (1, 0, 2)).reshape(T * B, D)   # time-major, flat
    flat_inputs = [x_flat]
    for (w_ih, w_hh, b_ih, b_hh) in params["layers"]:
        flat_inputs.append(jnp.transpose(w_ih))              # (D_in_l, 4H)
        flat_inputs.append(jnp.transpose(w_hh))              # (H, 4H)
        flat_inputs.append((b_ih + b_hh)[None, :])           # (1, 4H)
    fc_w = jnp.transpose(params["fc_w"])                     # (H, O)
    fc_w = jnp.pad(fc_w, ((0, 0), (0, O_pad - O)))           # (H, O_pad)
    fc_b = jnp.pad(params["fc_b"], (0, O_pad - O))[None, :]  # (1, O_pad)
    flat_inputs.append(fc_w)
    flat_inputs.append(fc_b)

    kernel = make_lstm_kernel(num_layers=L, seq_len=T, batch=B, hidden_dim=H)
    vmem_spec = pl.BlockSpec(memory_space=pltpu.MemorySpace.VMEM)

    out = pl.pallas_call(
        kernel,
        out_shape=jax.ShapeDtypeStruct((B, O_pad), jnp.float32),
        in_specs=[vmem_spec] * len(flat_inputs),
        out_specs=vmem_spec,
        scratch_shapes=[
            pltpu.VMEM((T * B, 4 * H), jnp.float32),   # hoisted pre-gates
            pltpu.VMEM((T * B, H), jnp.float32),       # inter-layer sequence
        ],
    )(*flat_inputs)
    return out[:, :O]


# ---------- pure-JAX reference (for correctness check) ----------
def lstm_model_ref(x, params):
    B, T, D = x.shape
    H = params["layers"][0][1].shape[1]
    h_seq = x
    for (w_ih, w_hh, b_ih, b_hh) in params["layers"]:
        h = jnp.zeros((B, H), jnp.float32)
        c = jnp.zeros((B, H), jnp.float32)
        outs = []
        for t in range(T):
            gates = h_seq[:, t, :] @ w_ih.T + b_ih + h @ w_hh.T + b_hh
            i = jax.nn.sigmoid(gates[:, 0 * H:1 * H])
            f = jax.nn.sigmoid(gates[:, 1 * H:2 * H])
            g = jnp.tanh(gates[:, 2 * H:3 * H])
            o = jax.nn.sigmoid(gates[:, 3 * H:4 * H])
            c = f * c + i * g
            h = o * jnp.tanh(c)
            outs.append(h)
        h_seq = jnp.stack(outs, axis=1)
    return h_seq[:, -1, :] @ params["fc_w"].T + params["fc_b"]


def init_params(key, input_dim, hidden_dim, layer_dim, output_dim):
    """PyTorch-style uniform(-1/sqrt(H), 1/sqrt(H)) init, deterministic."""
    bound = 1.0 / np.sqrt(hidden_dim)
    layers = []
    for l in range(layer_dim):
        d_in = input_dim if l == 0 else hidden_dim
        key, k1, k2, k3, k4 = jax.random.split(key, 5)
        layers.append((
            jax.random.uniform(k1, (4 * hidden_dim, d_in), jnp.float32,
                               -bound, bound),
            jax.random.uniform(k2, (4 * hidden_dim, hidden_dim), jnp.float32,
                               -bound, bound),
            jax.random.uniform(k3, (4 * hidden_dim,), jnp.float32,
                               -bound, bound),
            jax.random.uniform(k4, (4 * hidden_dim,), jnp.float32,
                               -bound, bound),
        ))
    key, kf1, kf2 = jax.random.split(key, 3)
    fc_bound = 1.0 / np.sqrt(hidden_dim)
    fc_w = jax.random.uniform(kf1, (output_dim, hidden_dim), jnp.float32,
                              -fc_bound, fc_bound)
    fc_b = jax.random.uniform(kf2, (output_dim,), jnp.float32,
                              -fc_bound, fc_bound)
    return {"layers": layers, "fc_w": fc_w, "fc_b": fc_b}


if __name__ == "__main__":
    B, T = 4, 8                       # batch, sequence length
    INPUT_DIM, HIDDEN_DIM = 16, 32
    LAYER_DIM, OUTPUT_DIM = 2, 8
    DROPOUT_PROB = 0.1                # inactive in eval/inference

    key = jax.random.PRNGKey(0)
    key, kx = jax.random.split(key)
    x = jax.random.normal(kx, (B, T, INPUT_DIM), jnp.float32)
    params = init_params(key, INPUT_DIM, HIDDEN_DIM, LAYER_DIM, OUTPUT_DIM)

    out = lstm_model_forward(x, params)
    out = jax.block_until_ready(out)

    ref = lstm_model_ref(x, params)
    assert out.shape == (B, OUTPUT_DIM), out.shape
    np.testing.assert_allclose(np.asarray(out), np.asarray(ref),
                               rtol=1e-4, atol=1e-4)
    print("KERNEL_OK")
</pallas_src>

<mosaic_0001>
module attributes {stable_mosaic.version = 11 : i64} {
  func.func @kernel(%arg0: memref<32x16xf32, #tpu.memory_space<vmem>>, %arg1: memref<16x128xf32, #tpu.memory_space<vmem>>, %arg2: memref<32x128xf32, #tpu.memory_space<vmem>>, %arg3: memref<1x128xf32, #tpu.memory_space<vmem>>, %arg4: memref<32x128xf32, #tpu.memory_space<vmem>>, %arg5: memref<32x128xf32, #tpu.memory_space<vmem>>, %arg6: memref<1x128xf32, #tpu.memory_space<vmem>>, %arg7: memref<32x128xf32, #tpu.memory_space<vmem>>, %arg8: memref<1x128xf32, #tpu.memory_space<vmem>>, %arg9: memref<4x128xf32, #tpu.memory_space<vmem>>, %arg10: memref<32x128xf32, #tpu.memory_space<vmem>>, %arg11: memref<32x32xf32, #tpu.memory_space<vmem>>) attributes {dimension_semantics = [], scalar_prefetch = 0 : i64, scratch_operands = 2 : i64, tpu.core_type = #tpu.core_type<tc>} {
    %c0 = arith.constant 0 : index
    %c0_0 = arith.constant 0 : index
    %0 = vector.load %arg0[%c0, %c0_0] : memref<32x16xf32, #tpu.memory_space<vmem>>, vector<32x16xf32>
    %c0_1 = arith.constant 0 : index
    %c0_2 = arith.constant 0 : index
    %1 = vector.load %arg1[%c0_1, %c0_2] : memref<16x128xf32, #tpu.memory_space<vmem>>, vector<16x128xf32>
    %cst = arith.constant dense<0.000000e+00> : vector<32x128xf32>
    %2 = tpu.matmul %0, %1, %cst {dimension_numbers = #tpu.dot_dimension_numbers<[1], [0], [0], [1], [0, 0, 1, 1], [], []>} : vector<32x16xf32>, vector<16x128xf32>, vector<32x128xf32> -> vector<32x128xf32>
    %c0_3 = arith.constant 0 : index
    %c0_4 = arith.constant 0 : index
    %3 = vector.load %arg3[%c0_3, %c0_4] : memref<1x128xf32, #tpu.memory_space<vmem>>, vector<1x128xf32>
    %4 = vector.broadcast %3 : vector<1x128xf32> to vector<32x128xf32>
    %5 = arith.addf %2, %4 : vector<32x128xf32>
    %c0_5 = arith.constant 0 : index
    %c0_6 = arith.constant 0 : index
    %6 = vector.load %arg10[%c0_5, %c0_6] : memref<32x128xf32, #tpu.memory_space<vmem>>, vector<32x128xf32>
    tpu.vector_store %arg10[%c0_5, %c0_6], %5 {strides = array<i32>} : memref<32x128xf32, #tpu.memory_space<vmem>>, vector<32x128xf32>,
    %c0_7 = arith.constant 0 : index
    %c0_8 = arith.constant 0 : index
    %7 = vector.load %arg2[%c0_7, %c0_8] : memref<32x128xf32, #tpu.memory_space<vmem>>, vector<32x128xf32>
    %cst_9 = arith.constant 0.000000e+00 : f32
    %8 = vector.broadcast %cst_9 : f32 to vector<4x32xf32>
    %cst_10 = arith.constant 0.000000e+00 : f32
    %9 = vector.broadcast %cst_10 : f32 to vector<4x32xf32>
    %c0_11 = arith.constant 0 : index
    %c0_12 = arith.constant 0 : index
    %10 = vector.load %arg10[%c0_11, %c0_12] : memref<32x128xf32, #tpu.memory_space<vmem>>, vector<4x128xf32>
    %cst_13 = arith.constant dense<0.000000e+00> : vector<4x128xf32>
    %11 = tpu.matmul %8, %7, %cst_13 {dimension_numbers = #tpu.dot_dimension_numbers<[1], [0], [0], [1], [0, 0, 1, 1], [], []>} : vector<4x32xf32>, vector<32x128xf32>, vector<4x128xf32> -> vector<4x128xf32>
    %12 = arith.addf %10, %11 : vector<4x128xf32>
    %13 = arith.negf %12 : vector<4x128xf32>
    %14 = math.exp %13 : vector<4x128xf32>
    %cst_14 = arith.constant 1.000000e+00 : f32
    %15 = vector.broadcast %cst_14 : f32 to vector<4x128xf32>
    %16 = arith.addf %15, %14 : vector<4x128xf32>
    %17 = arith.divf %15, %16 : vector<4x128xf32>
    %18 = math.tanh %12 : vector<4x128xf32>
    %19 = vector.extract_strided_slice %17 {offsets = [0, 0], sizes = [4, 32], strides = [1, 1]} : vector<4x128xf32> to vector<4x32xf32>
    %20 = vector.extract_strided_slice %17 {offsets = [0, 32], sizes = [4, 32], strides = [1, 1]} : vector<4x128xf32> to vector<4x32xf32>
    %21 = vector.extract_strided_slice %18 {offsets = [0, 64], sizes = [4, 32], strides = [1, 1]} : vector<4x128xf32> to vector<4x32xf32>
    %22 = vector.extract_strided_slice %17 {offsets = [0, 96], sizes = [4, 32], strides = [1, 1]} : vector<4x128xf32> to vector<4x32xf32>
    %23 = arith.mulf %20, %9 : vector<4x32xf32>
    %24 = arith.mulf %19, %21 : vector<4x32xf32>
    %25 = arith.addf %23, %24 : vector<4x32xf32>
    %26 = math.tanh %25 : vector<4x32xf32>
    %27 = arith.mulf %22, %26 : vector<4x32xf32>
    %c0_15 = arith.constant 0 : index
    %c0_16 = arith.constant 0 : index
    %28 = vector.load %arg11[%c0_15, %c0_16] : memref<32x32xf32, #tpu.memory_space<vmem>>, vector<4x32xf32>
    tpu.vector_store %arg11[%c0_15, %c0_16], %27 {strides = array<i32>} : memref<32x32xf32, #tpu.memory_space<vmem>>, vector<4x32xf32>,
    %c4 = arith.constant 4 : index
    %c0_17 = arith.constant 0 : index
    %29 = vector.load %arg10[%c4, %c0_17] : memref<32x128xf32, #tpu.memory_space<vmem>>, vector<4x128xf32>
    %cst_18 = arith.constant dense<0.000000e+00> : vector<4x128xf32>
    %30 = tpu.matmul %27, %7, %cst_18 {dimension_numbers = #tpu.dot_dimension_numbers<[1], [0], [0], [1], [0, 0, 1, 1], [], []>} : vector<4x32xf32>, vector<32x128xf32>, vector<4x128xf32> -> vector<4x128xf32>
    %31 = arith.addf %29, %30 : vector<4x128xf32>
    %32 = arith.negf %31 : vector<4x128xf32>
    %33 = math.exp %32 : vector<4x128xf32>
    %cst_19 = arith.constant 1.000000e+00 : f32
    %34 = vector.broadcast %cst_19 : f32 to vector<4x128xf32>
    %35 = arith.addf %34, %33 : vector<4x128xf32>
    %36 = arith.divf %34, %35 : vector<4x128xf32>
    %37 = math.tanh %31 : vector<4x128xf32>
    %38 = vector.extract_strided_slice %36 {offsets = [0, 0], sizes = [4, 32], strides = [1, 1]} : vector<4x128xf32> to vector<4x32xf32>
    %39 = vector.extract_strided_slice %36 {offsets = [0, 32], sizes = [4, 32], strides = [1, 1]} : vector<4x128xf32> to vector<4x32xf32>
    %40 = vector.extract_strided_slice %37 {offsets = [0, 64], sizes = [4, 32], strides = [1, 1]} : vector<4x128xf32> to vector<4x32xf32>
    %41 = vector.extract_strided_slice %36 {offsets = [0, 96], sizes = [4, 32], strides = [1, 1]} : vector<4x128xf32> to vector<4x32xf32>
    %42 = arith.mulf %39, %25 : vector<4x32xf32>
    %43 = arith.mulf %38, %40 : vector<4x32xf32>
    %44 = arith.addf %42, %43 : vector<4x32xf32>
    %45 = math.tanh %44 : vector<4x32xf32>
    %46 = arith.mulf %41, %45 : vector<4x32xf32>
    %c4_20 = arith.constant 4 : index
    %c0_21 = arith.constant 0 : index
    %47 = vector.load %arg11[%c4_20, %c0_21] : memref<32x32xf32, #tpu.memory_space<vmem>>, vector<4x32xf32>
    tpu.vector_store %arg11[%c4_20, %c0_21], %46 {strides = array<i32>} : memref<32x32xf32, #tpu.memory_space<vmem>>, vector<4x32xf32>,
    %c8 = arith.constant 8 : index
    %c0_22 = arith.constant 0 : index
    %48 = vector.load %arg10[%c8, %c0_22] : memref<32x128xf32, #tpu.memory_space<vmem>>, vector<4x128xf32>
    %cst_23 = arith.constant dense<0.000000e+00> : vector<4x128xf32>
    %49 = tpu.matmul %46, %7, %cst_23 {dimension_numbers = #tpu.dot_dimension_numbers<[1], [0], [0], [1], [0, 0, 1, 1], [], []>} : vector<4x32xf32>, vector<32x128xf32>, vector<4x128xf32> -> vector<4x128xf32>
    %50 = arith.addf %48, %49 : vector<4x128xf32>
    %51 = arith.negf %50 : vector<4x128xf32>
    %52 = math.exp %51 : vector<4x128xf32>
    %cst_24 = arith.constant 1.000000e+00 : f32
    %53 = vector.broadcast %cst_24 : f32 to vector<4x128xf32>
    %54 = arith.addf %53, %52 : vector<4x128xf32>
    %55 = arith.divf %53, %54 : vector<4x128xf32>
    %56 = math.tanh %50 : vector<4x128xf32>
    %57 = vector.extract_strided_slice %55 {offsets = [0, 0], sizes = [4, 32], strides = [1, 1]} : vector<4x128xf32> to vector<4x32xf32>
    %58 = vector.extract_strided_slice %55 {offsets = [0, 32], sizes = [4, 32], strides = [1, 1]} : vector<4x128xf32> to vector<4x32xf32>
    %59 = vector.extract_strided_slice %56 {offsets = [0, 64], sizes = [4, 32], strides = [1, 1]} : vector<4x128xf32> to vector<4x32xf32>
    %60 = vector.extract_strided_slice %55 {offsets = [0, 96], sizes = [4, 32], strides = [1, 1]} : vector<4x128xf32> to vector<4x32xf32>
    %61 = arith.mulf %58, %44 : vector<4x32xf32>
    %62 = arith.mulf %57, %59 : vector<4x32xf32>
    %63 = arith.addf %61, %62 : vector<4x32xf32>
    %64 = math.tanh %63 : vector<4x32xf32>
    %65 = arith.mulf %60, %64 : vector<4x32xf32>
    %c8_25 = arith.constant 8 : index
    %c0_26 = arith.constant 0 : index
    %66 = vector.load %arg11[%c8_25, %c0_26] : memref<32x32xf32, #tpu.memory_space<vmem>>, vector<4x32xf32>
    tpu.vector_store %arg11[%c8_25, %c0_26], %65 {strides = array<i32>} : memref<32x32xf32, #tpu.memory_space<vmem>>, vector<4x32xf32>,
    %c12 = arith.constant 12 : index
    %c0_27 = arith.constant 0 : index
    %67 = vector.load %arg10[%c12, %c0_27] : memref<32x128xf32, #tpu.memory_space<vmem>>, vector<4x128xf32>
    %cst_28 = arith.constant dense<0.000000e+00> : vector<4x128xf32>
    %68 = tpu.matmul %65, %7, %cst_28 {dimension_numbers = #tpu.dot_dimension_numbers<[1], [0], [0], [1], [0, 0, 1, 1], [], []>} : vector<4x32xf32>, vector<32x128xf32>, vector<4x128xf32> -> vector<4x128xf32>
    %69 = arith.addf %67, %68 : vector<4x128xf32>
    %70 = arith.negf %69 : vector<4x128xf32>
    %71 = math.exp %70 : vector<4x128xf32>
    %cst_29 = arith.constant 1.000000e+00 : f32
    %72 = vector.broadcast %cst_29 : f32 to vector<4x128xf32>
    %73 = arith.addf %72, %71 : vector<4x128xf32>
    %74 = arith.divf %72, %73 : vector<4x128xf32>
    %75 = math.tanh %69 : vector<4x128xf32>
    %76 = vector.extract_strided_slice %74 {offsets = [0, 0], sizes = [4, 32], strides = [1, 1]} : vector<4x128xf32> to vector<4x32xf32>
    %77 = vector.extract_strided_slice %74 {offsets = [0, 32], sizes = [4, 32], strides = [1, 1]} : vector<4x128xf32> to vector<4x32xf32>
    %78 = vector.extract_strided_slice %75 {offsets = [0, 64], sizes = [4, 32], strides = [1, 1]} : vector<4x128xf32> to vector<4x32xf32>
    %79 = vector.extract_strided_slice %74 {offsets = [0, 96], sizes = [4, 32], strides = [1, 1]} : vector<4x128xf32> to vector<4x32xf32>
    %80 = arith.mulf %77, %63 : vector<4x32xf32>
    %81 = arith.mulf %76, %78 : vector<4x32xf32>
    %82 = arith.addf %80, %81 : vector<4x32xf32>
    %83 = math.tanh %82 : vector<4x32xf32>
    %84 = arith.mulf %79, %83 : vector<4x32xf32>
    %c12_30 = arith.constant 12 : index
    %c0_31 = arith.constant 0 : index
    %85 = vector.load %arg11[%c12_30, %c0_31] : memref<32x32xf32, #tpu.memory_space<vmem>>, vector<4x32xf32>
    tpu.vector_store %arg11[%c12_30, %c0_31], %84 {strides = array<i32>} : memref<32x32xf32, #tpu.memory_space<vmem>>, vector<4x32xf32>,
    %c16 = arith.constant 16 : index
    %c0_32 = arith.constant 0 : index
    %86 = vector.load %arg10[%c16, %c0_32] : memref<32x128xf32, #tpu.memory_space<vmem>>, vector<4x128xf32>
    %cst_33 = arith.constant dense<0.000000e+00> : vector<4x128xf32>
    %87 = tpu.matmul %84, %7, %cst_33 {dimension_numbers = #tpu.dot_dimension_numbers<[1], [0], [0], [1], [0, 0, 1, 1], [], []>} : vector<4x32xf32>, vector<32x128xf32>, vector<4x128xf32> -> vector<4x128xf32>
    %88 = arith.addf %86, %87 : vector<4x128xf32>
    %89 = arith.negf %88 : vector<4x128xf32>
    %90 = math.exp %89 : vector<4x128xf32>
    %cst_34 = arith.constant 1.000000e+00 : f32
    %91 = vector.broadcast %cst_34 : f32 to vector<4x128xf32>
    %92 = arith.addf %91, %90 : vector<4x128xf32>
    %93 = arith.divf %91, %92 : vector<4x128xf32>
    %94 = math.tanh %88 : vector<4x128xf32>
    %95 = vector.extract_strided_slice %93 {offsets = [0, 0], sizes = [4, 32], strides = [1, 1]} : vector<4x128xf32> to vector<4x32xf32>
    %96 = vector.extract_strided_slice %93 {offsets = [0, 32], sizes = [4, 32], strides = [1, 1]} : vector<4x128xf32> to vector<4x32xf32>
    %97 = vector.extract_strided_slice %94 {offsets = [0, 64], sizes = [4, 32], strides = [1, 1]} : vector<4x128xf32> to vector<4x32xf32>
    %98 = vector.extract_strided_slice %93 {offsets = [0, 96], sizes = [4, 32], strides = [1, 1]} : vector<4x128xf32> to vector<4x32xf32>
    %99 = arith.mulf %96, %82 : vector<4x32xf32>
    %100 = arith.mulf %95, %97 : vector<4x32xf32>
    %101 = arith.addf %99, %100 : vector<4x32xf32>
    %102 = math.tanh %101 : vector<4x32xf32>
    %103 = arith.mulf %98, %102 : vector<4x32xf32>
    %c16_35 = arith.constant 16 : index
    %c0_36 = arith.constant 0 : index
    %104 = vector.load %arg11[%c16_35, %c0_36] : memref<32x32xf32, #tpu.memory_space<vmem>>, vector<4x32xf32>
    tpu.vector_store %arg11[%c16_35, %c0_36], %103 {strides = array<i32>} : memref<32x32xf32, #tpu.memory_space<vmem>>, vector<4x32xf32>,
    %c20 = arith.constant 20 : index
    %c0_37 = arith.constant 0 : index
    %105 = vector.load %arg10[%c20, %c0_37] : memref<32x128xf32, #tpu.memory_space<vmem>>, vector<4x128xf32>
    %cst_38 = arith.constant dense<0.000000e+00> : vector<4x128xf32>
    %106 = tpu.matmul %103, %7, %cst_38 {dimension_numbers = #tpu.dot_dimension_numbers<[1], [0], [0], [1], [0, 0, 1, 1], [], []>} : vector<4x32xf32>, vector<32x128xf32>, vector<4x128xf32> -> vector<4x128xf32>
    %107 = arith.addf %105, %106 : vector<4x128xf32>
    %108 = arith.negf %107 : vector<4x128xf32>
    %109 = math.exp %108 : vector<4x128xf32>
    %cst_39 = arith.constant 1.000000e+00 : f32
    %110 = vector.broadcast %cst_39 : f32 to vector<4x128xf32>
    %111 = arith.addf %110, %109 : vector<4x128xf32>
    %112 = arith.divf %110, %111 : vector<4x128xf32>
    %113 = math.tanh %107 : vector<4x128xf32>
    %114 = vector.extract_strided_slice %112 {offsets = [0, 0], sizes = [4, 32], strides = [1, 1]} : vector<4x128xf32> to vector<4x32xf32>
    %115 = vector.extract_strided_slice %112 {offsets = [0, 32], sizes = [4, 32], strides = [1, 1]} : vector<4x128xf32> to vector<4x32xf32>
    %116 = vector.extract_strided_slice %113 {offsets = [0, 64], sizes = [4, 32], strides = [1, 1]} : vector<4x128xf32> to vector<4x32xf32>
    %117 = vector.extract_strided_slice %112 {offsets = [0, 96], sizes = [4, 32], strides = [1, 1]} : vector<4x128xf32> to vector<4x32xf32>
    %118 = arith.mulf %115, %101 : vector<4x32xf32>
    %119 = arith.mulf %114, %116 : vector<4x32xf32>
    %120 = arith.addf %118, %119 : vector<4x32xf32>
    %121 = math.tanh %120 : vector<4x32xf32>
    %122 = arith.mulf %117, %121 : vector<4x32xf32>
    %c20_40 = arith.constant 20 : index
    %c0_41 = arith.constant 0 : index
    %123 = vector.load %arg11[%c20_40, %c0_41] : memref<32x32xf32, #tpu.memory_space<vmem>>, vector<4x32xf32>
    tpu.vector_store %arg11[%c20_40, %c0_41], %122 {strides = array<i32>} : memref<32x32xf32, #tpu.memory_space<vmem>>, vector<4x32xf32>,
    %c24 = arith.constant 24 : index
    %c0_42 = arith.constant 0 : index
    %124 = vector.load %arg10[%c24, %c0_42] : memref<32x128xf32, #tpu.memory_space<vmem>>, vector<4x128xf32>
    %cst_43 = arith.constant dense<0.000000e+00> : vector<4x128xf32>
    %125 = tpu.matmul %122, %7, %cst_43 {dimension_numbers = #tpu.dot_dimension_numbers<[1], [0], [0], [1], [0, 0, 1, 1], [], []>} : vector<4x32xf32>, vector<32x128xf32>, vector<4x128xf32> -> vector<4x128xf32>
    %126 = arith.addf %124, %125 : vector<4x128xf32>
    %127 = arith.negf %126 : vector<4x128xf32>
    %128 = math.exp %127 : vector<4x128xf32>
    %cst_44 = arith.constant 1.000000e+00 : f32
    %129 = vector.broadcast %cst_44 : f32 to vector<4x128xf32>
    %130 = arith.addf %129, %128 : vector<4x128xf32>
    %131 = arith.divf %129, %130 : vector<4x128xf32>
    %132 = math.tanh %126 : vector<4x128xf32>
    %133 = vector.extract_strided_slice %131 {offsets = [0, 0], sizes = [4, 32], strides = [1, 1]} : vector<4x128xf32> to vector<4x32xf32>
    %134 = vector.extract_strided_slice %131 {offsets = [0, 32], sizes = [4, 32], strides = [1, 1]} : vector<4x128xf32> to vector<4x32xf32>
    %135 = vector.extract_strided_slice %132 {offsets = [0, 64], sizes = [4, 32], strides = [1, 1]} : vector<4x128xf32> to vector<4x32xf32>
    %136 = vector.extract_strided_slice %131 {offsets = [0, 96], sizes = [4, 32], strides = [1, 1]} : vector<4x128xf32> to vector<4x32xf32>
    %137 = arith.mulf %134, %120 : vector<4x32xf32>
    %138 = arith.mulf %133, %135 : vector<4x32xf32>
    %139 = arith.addf %137, %138 : vector<4x32xf32>
    %140 = math.tanh %139 : vector<4x32xf32>
    %141 = arith.mulf %136, %140 : vector<4x32xf32>
    %c24_45 = arith.constant 24 : index
    %c0_46 = arith.constant 0 : index
    %142 = vector.load %arg11[%c24_45, %c0_46] : memref<32x32xf32, #tpu.memory_space<vmem>>, vector<4x32xf32>
    tpu.vector_store %arg11[%c24_45, %c0_46], %141 {strides = array<i32>} : memref<32x32xf32, #tpu.memory_space<vmem>>, vector<4x32xf32>,
    %c28 = arith.constant 28 : index
    %c0_47 = arith.constant 0 : index
    %143 = vector.load %arg10[%c28, %c0_47] : memref<32x128xf32, #tpu.memory_space<vmem>>, vector<4x128xf32>
    %cst_48 = arith.constant dense<0.000000e+00> : vector<4x128xf32>
    %144 = tpu.matmul %141, %7, %cst_48 {dimension_numbers = #tpu.dot_dimension_numbers<[1], [0], [0], [1], [0, 0, 1, 1], [], []>} : vector<4x32xf32>, vector<32x128xf32>, vector<4x128xf32> -> vector<4x128xf32>
    %145 = arith.addf %143, %144 : vector<4x128xf32>
    %146 = arith.negf %145 : vector<4x128xf32>
    %147 = math.exp %146 : vector<4x128xf32>
    %cst_49 = arith.constant 1.000000e+00 : f32
    %148 = vector.broadcast %cst_49 : f32 to vector<4x128xf32>
    %149 = arith.addf %148, %147 : vector<4x128xf32>
    %150 = arith.divf %148, %149 : vector<4x128xf32>
    %151 = math.tanh %145 : vector<4x128xf32>
    %152 = vector.extract_strided_slice %150 {offsets = [0, 0], sizes = [4, 32], strides = [1, 1]} : vector<4x128xf32> to vector<4x32xf32>
    %153 = vector.extract_strided_slice %150 {offsets = [0, 32], sizes = [4, 32], strides = [1, 1]} : vector<4x128xf32> to vector<4x32xf32>
    %154 = vector.extract_strided_slice %151 {offsets = [0, 64], sizes = [4, 32], strides = [1, 1]} : vector<4x128xf32> to vector<4x32xf32>
    %155 = vector.extract_strided_slice %150 {offsets = [0, 96], sizes = [4, 32], strides = [1, 1]} : vector<4x128xf32> to vector<4x32xf32>
    %156 = arith.mulf %153, %139 : vector<4x32xf32>
    %157 = arith.mulf %152, %154 : vector<4x32xf32>
    %158 = arith.addf %156, %157 : vector<4x32xf32>
    %159 = math.tanh %158 : vector<4x32xf32>
    %160 = arith.mulf %155, %159 : vector<4x32xf32>
    %c28_50 = arith.constant 28 : index
    %c0_51 = arith.constant 0 : index
    %161 = vector.load %arg11[%c28_50, %c0_51] : memref<32x32xf32, #tpu.memory_space<vmem>>, vector<4x32xf32>
    tpu.vector_store %arg11[%c28_50, %c0_51], %160 {strides = array<i32>} : memref<32x32xf32, #tpu.memory_space<vmem>>, vector<4x32xf32>,
    %c0_52 = arith.constant 0 : index
    %c0_53 = arith.constant 0 : index
    %162 = vector.load %arg11[%c0_52, %c0_53] : memref<32x32xf32, #tpu.memory_space<vmem>>, vector<32x32xf32>
    %c0_54 = arith.constant 0 : index
    %c0_55 = arith.constant 0 : index
    %163 = vector.load %arg4[%c0_54, %c0_55] : memref<32x128xf32, #tpu.memory_space<vmem>>, vector<32x128xf32>
    %cst_56 = arith.constant dense<0.000000e+00> : vector<32x128xf32>
    %164 = tpu.matmul %162, %163, %cst_56 {dimension_numbers = #tpu.dot_dimension_numbers<[1], [0], [0], [1], [0, 0, 1, 1], [], []>} : vector<32x32xf32>, vector<32x128xf32>, vector<32x128xf32> -> vector<32x128xf32>
    %c0_57 = arith.constant 0 : index
    %c0_58 = arith.constant 0 : index
    %165 = vector.load %arg6[%c0_57, %c0_58] : memref<1x128xf32, #tpu.memory_space<vmem>>, vector<1x128xf32>
    %166 = vector.broadcast %165 : vector<1x128xf32> to vector<32x128xf32>
    %167 = arith.addf %164, %166 : vector<32x128xf32>
    %c0_59 = arith.constant 0 : index
    %c0_60 = arith.constant 0 : index
    %168 = vector.load %arg10[%c0_59, %c0_60] : memref<32x128xf32, #tpu.memory_space<vmem>>, vector<32x128xf32>
    tpu.vector_store %arg10[%c0_59, %c0_60], %167 {strides = array<i32>} : memref<32x128xf32, #tpu.memory_space<vmem>>, vector<32x128xf32>,
    %c0_61 = arith.constant 0 : index
    %c0_62 = arith.constant 0 : index
    %169 = vector.load %arg5[%c0_61, %c0_62] : memref<32x128xf32, #tpu.memory_space<vmem>>, vector<32x128xf32>
    %cst_63 = arith.constant 0.000000e+00 : f32
    %170 = vector.broadcast %cst_63 : f32 to vector<4x32xf32>
    %cst_64 = arith.constant 0.000000e+00 : f32
    %171 = vector.broadcast %cst_64 : f32 to vector<4x32xf32>
    %c0_65 = arith.constant 0 : index
    %c0_66 = arith.constant 0 : index
    %172 = vector.load %arg10[%c0_65, %c0_66] : memref<32x128xf32, #tpu.memory_space<vmem>>, vector<4x128xf32>
    %cst_67 = arith.constant dense<0.000000e+00> : vector<4x128xf32>
    %173 = tpu.matmul %170, %169, %cst_67 {dimension_numbers = #tpu.dot_dimension_numbers<[1], [0], [0], [1], [0, 0, 1, 1], [], []>} : vector<4x32xf32>, vector<32x128xf32>, vector<4x128xf32> -> vector<4x128xf32>
    %174 = arith.addf %172, %173 : vector<4x128xf32>
    %175 = arith.negf %174 : vector<4x128xf32>
    %176 = math.exp %175 : vector<4x128xf32>
    %cst_68 = arith.constant 1.000000e+00 : f32
    %177 = vector.broadcast %cst_68 : f32 to vector<4x128xf32>
    %178 = arith.addf %177, %176 : vector<4x128xf32>
    %179 = arith.divf %177, %178 : vector<4x128xf32>
    %180 = math.tanh %174 : vector<4x128xf32>
    %181 = vector.extract_strided_slice %179 {offsets = [0, 0], sizes = [4, 32], strides = [1, 1]} : vector<4x128xf32> to vector<4x32xf32>
    %182 = vector.extract_strided_slice %179 {offsets = [0, 32], sizes = [4, 32], strides = [1, 1]} : vector<4x128xf32> to vector<4x32xf32>
    %183 = vector.extract_strided_slice %180 {offsets = [0, 64], sizes = [4, 32], strides = [1, 1]} : vector<4x128xf32> to vector<4x32xf32>
    %184 = vector.extract_strided_slice %179 {offsets = [0, 96], sizes = [4, 32], strides = [1, 1]} : vector<4x128xf32> to vector<4x32xf32>
    %185 = arith.mulf %182, %171 : vector<4x32xf32>
    %186 = arith.mulf %181, %183 : vector<4x32xf32>
    %187 = arith.addf %185, %186 : vector<4x32xf32>
    %188 = math.tanh %187 : vector<4x32xf32>
    %189 = arith.mulf %184, %188 : vector<4x32xf32>
    %c4_69 = arith.constant 4 : index
    %c0_70 = arith.constant 0 : index
    %190 = vector.load %arg10[%c4_69, %c0_70] : memref<32x128xf32, #tpu.memory_space<vmem>>, vector<4x128xf32>
    %cst_71 = arith.constant dense<0.000000e+00> : vector<4x128xf32>
    %191 = tpu.matmul %189, %169, %cst_71 {dimension_numbers = #tpu.dot_dimension_numbers<[1], [0], [0], [1], [0, 0, 1, 1], [], []>} : vector<4x32xf32>, vector<32x128xf32>, vector<4x128xf32> -> vector<4x128xf32>
    %192 = arith.addf %190, %191 : vector<4x128xf32>
    %193 = arith.negf %192 : vector<4x128xf32>
    %194 = math.exp %193 : vector<4x128xf32>
    %cst_72 = arith.constant 1.000000e+00 : f32
    %195 = vector.broadcast %cst_72 : f32 to vector<4x128xf32>
    %196 = arith.addf %195, %194 : vector<4x128xf32>
    %197 = arith.divf %195, %196 : vector<4x128xf32>
    %198 = math.tanh %192 : vector<4x128xf32>
    %199 = vector.extract_strided_slice %197 {offsets = [0, 0], sizes = [4, 32], strides = [1, 1]} : vector<4x128xf32> to vector<4x32xf32>
    %200 = vector.extract_strided_slice %197 {offsets = [0, 32], sizes = [4, 32], strides = [1, 1]} : vector<4x128xf32> to vector<4x32xf32>
    %201 = vector.extract_strided_slice %198 {offsets = [0, 64], sizes = [4, 32], strides = [1, 1]} : vector<4x128xf32> to vector<4x32xf32>
    %202 = vector.extract_strided_slice %197 {offsets = [0, 96], sizes = [4, 32], strides = [1, 1]} : vector<4x128xf32> to vector<4x32xf32>
    %203 = arith.mulf %200, %187 : vector<4x32xf32>
    %204 = arith.mulf %199, %201 : vector<4x32xf32>
    %205 = arith.addf %203, %204 : vector<4x32xf32>
    %206 = math.tanh %205 : vector<4x32xf32>
    %207 = arith.mulf %202, %206 : vector<4x32xf32>
    %c8_73 = arith.constant 8 : index
    %c0_74 = arith.constant 0 : index
    %208 = vector.load %arg10[%c8_73, %c0_74] : memref<32x128xf32, #tpu.memory_space<vmem>>, vector<4x128xf32>
    %cst_75 = arith.constant dense<0.000000e+00> : vector<4x128xf32>
    %209 = tpu.matmul %207, %169, %cst_75 {dimension_numbers = #tpu.dot_dimension_numbers<[1], [0], [0], [1], [0, 0, 1, 1], [], []>} : vector<4x32xf32>, vector<32x128xf32>, vector<4x128xf32> -> vector<4x128xf32>
    %210 = arith.addf %208, %209 : vector<4x128xf32>
    %211 = arith.negf %210 : vector<4x128xf32>
    %212 = math.exp %211 : vector<4x128xf32>
    %cst_76 = arith.constant 1.000000e+00 : f32
    %213 = vector.broadcast %cst_76 : f32 to vector<4x128xf32>
    %214 = arith.addf %213, %212 : vector<4x128xf32>
    %215 = arith.divf %213, %214 : vector<4x128xf32>
    %216 = math.tanh %210 : vector<4x128xf32>
    %217 = vector.extract_strided_slice %215 {offsets = [0, 0], sizes = [4, 32], strides = [1, 1]} : vector<4x128xf32> to vector<4x32xf32>
    %218 = vector.extract_strided_slice %215 {offsets = [0, 32], sizes = [4, 32], strides = [1, 1]} : vector<4x128xf32> to vector<4x32xf32>
    %219 = vector.extract_strided_slice %216 {offsets = [0, 64], sizes = [4, 32], strides = [1, 1]} : vector<4x128xf32> to vector<4x32xf32>
    %220 = vector.extract_strided_slice %215 {offsets = [0, 96], sizes = [4, 32], strides = [1, 1]} : vector<4x128xf32> to vector<4x32xf32>
    %221 = arith.mulf %218, %205 : vector<4x32xf32>
    %222 = arith.mulf %217, %219 : vector<4x32xf32>
    %223 = arith.addf %221, %222 : vector<4x32xf32>
    %224 = math.tanh %223 : vector<4x32xf32>
    %225 = arith.mulf %220, %224 : vector<4x32xf32>
    %c12_77 = arith.constant 12 : index
    %c0_78 = arith.constant 0 : index
    %226 = vector.load %arg10[%c12_77, %c0_78] : memref<32x128xf32, #tpu.memory_space<vmem>>, vector<4x128xf32>
    %cst_79 = arith.constant dense<0.000000e+00> : vector<4x128xf32>
    %227 = tpu.matmul %225, %169, %cst_79 {dimension_numbers = #tpu.dot_dimension_numbers<[1], [0], [0], [1], [0, 0, 1, 1], [], []>} : vector<4x32xf32>, vector<32x128xf32>, vector<4x128xf32> -> vector<4x128xf32>
    %228 = arith.addf %226, %227 : vector<4x128xf32>
    %229 = arith.negf %228 : vector<4x128xf32>
    %230 = math.exp %229 : vector<4x128xf32>
    %cst_80 = arith.constant 1.000000e+00 : f32
    %231 = vector.broadcast %cst_80 : f32 to vector<4x128xf32>
    %232 = arith.addf %231, %230 : vector<4x128xf32>
    %233 = arith.divf %231, %232 : vector<4x128xf32>
    %234 = math.tanh %228 : vector<4x128xf32>
    %235 = vector.extract_strided_slice %233 {offsets = [0, 0], sizes = [4, 32], strides = [1, 1]} : vector<4x128xf32> to vector<4x32xf32>
    %236 = vector.extract_strided_slice %233 {offsets = [0, 32], sizes = [4, 32], strides = [1, 1]} : vector<4x128xf32> to vector<4x32xf32>
    %237 = vector.extract_strided_slice %234 {offsets = [0, 64], sizes = [4, 32], strides = [1, 1]} : vector<4x128xf32> to vector<4x32xf32>
    %238 = vector.extract_strided_slice %233 {offsets = [0, 96], sizes = [4, 32], strides = [1, 1]} : vector<4x128xf32> to vector<4x32xf32>
    %239 = arith.mulf %236, %223 : vector<4x32xf32>
    %240 = arith.mulf %235, %237 : vector<4x32xf32>
    %241 = arith.addf %239, %240 : vector<4x32xf32>
    %242 = math.tanh %241 : vector<4x32xf32>
    %243 = arith.mulf %238, %242 : vector<4x32xf32>
    %c16_81 = arith.constant 16 : index
    %c0_82 = arith.constant 0 : index
    %244 = vector.load %arg10[%c16_81, %c0_82] : memref<32x128xf32, #tpu.memory_space<vmem>>, vector<4x128xf32>
    %cst_83 = arith.constant dense<0.000000e+00> : vector<4x128xf32>
    %245 = tpu.matmul %243, %169, %cst_83 {dimension_numbers = #tpu.dot_dimension_numbers<[1], [0], [0], [1], [0, 0, 1, 1], [], []>} : vector<4x32xf32>, vector<32x128xf32>, vector<4x128xf32> -> vector<4x128xf32>
    %246 = arith.addf %244, %245 : vector<4x128xf32>
    %247 = arith.negf %246 : vector<4x128xf32>
    %248 = math.exp %247 : vector<4x128xf32>
    %cst_84 = arith.constant 1.000000e+00 : f32
    %249 = vector.broadcast %cst_84 : f32 to vector<4x128xf32>
    %250 = arith.addf %249, %248 : vector<4x128xf32>
    %251 = arith.divf %249, %250 : vector<4x128xf32>
    %252 = math.tanh %246 : vector<4x128xf32>
    %253 = vector.extract_strided_slice %251 {offsets = [0, 0], sizes = [4, 32], strides = [1, 1]} : vector<4x128xf32> to vector<4x32xf32>
    %254 = vector.extract_strided_slice %251 {offsets = [0, 32], sizes = [4, 32], strides = [1, 1]} : vector<4x128xf32> to vector<4x32xf32>
    %255 = vector.extract_strided_slice %252 {offsets = [0, 64], sizes = [4, 32], strides = [1, 1]} : vector<4x128xf32> to vector<4x32xf32>
    %256 = vector.extract_strided_slice %251 {offsets = [0, 96], sizes = [4, 32], strides = [1, 1]} : vector<4x128xf32> to vector<4x32xf32>
    %257 = arith.mulf %254, %241 : vector<4x32xf32>
    %258 = arith.mulf %253, %255 : vector<4x32xf32>
    %259 = arith.addf %257, %258 : vector<4x32xf32>
    %260 = math.tanh %259 : vector<4x32xf32>
    %261 = arith.mulf %256, %260 : vector<4x32xf32>
    %c20_85 = arith.constant 20 : index
    %c0_86 = arith.constant 0 : index
    %262 = vector.load %arg10[%c20_85, %c0_86] : memref<32x128xf32, #tpu.memory_space<vmem>>, vector<4x128xf32>
    %cst_87 = arith.constant dense<0.000000e+00> : vector<4x128xf32>
    %263 = tpu.matmul %261, %169, %cst_87 {dimension_numbers = #tpu.dot_dimension_numbers<[1], [0], [0], [1], [0, 0, 1, 1], [], []>} : vector<4x32xf32>, vector<32x128xf32>, vector<4x128xf32> -> vector<4x128xf32>
    %264 = arith.addf %262, %263 : vector<4x128xf32>
    %265 = arith.negf %264 : vector<4x128xf32>
    %266 = math.exp %265 : vector<4x128xf32>
    %cst_88 = arith.constant 1.000000e+00 : f32
    %267 = vector.broadcast %cst_88 : f32 to vector<4x128xf32>
    %268 = arith.addf %267, %266 : vector<4x128xf32>
    %269 = arith.divf %267, %268 : vector<4x128xf32>
    %270 = math.tanh %264 : vector<4x128xf32>
    %271 = vector.extract_strided_slice %269 {offsets = [0, 0], sizes = [4, 32], strides = [1, 1]} : vector<4x128xf32> to vector<4x32xf32>
    %272 = vector.extract_strided_slice %269 {offsets = [0, 32], sizes = [4, 32], strides = [1, 1]} : vector<4x128xf32> to vector<4x32xf32>
    %273 = vector.extract_strided_slice %270 {offsets = [0, 64], sizes = [4, 32], strides = [1, 1]} : vector<4x128xf32> to vector<4x32xf32>
    %274 = vector.extract_strided_slice %269 {offsets = [0, 96], sizes = [4, 32], strides = [1, 1]} : vector<4x128xf32> to vector<4x32xf32>
    %275 = arith.mulf %272, %259 : vector<4x32xf32>
    %276 = arith.mulf %271, %273 : vector<4x32xf32>
    %277 = arith.addf %275, %276 : vector<4x32xf32>
    %278 = math.tanh %277 : vector<4x32xf32>
    %279 = arith.mulf %274, %278 : vector<4x32xf32>
    %c24_89 = arith.constant 24 : index
    %c0_90 = arith.constant 0 : index
    %280 = vector.load %arg10[%c24_89, %c0_90] : memref<32x128xf32, #tpu.memory_space<vmem>>, vector<4x128xf32>
    %cst_91 = arith.constant dense<0.000000e+00> : vector<4x128xf32>
    %281 = tpu.matmul %279, %169, %cst_91 {dimension_numbers = #tpu.dot_dimension_numbers<[1], [0], [0], [1], [0, 0, 1, 1], [], []>} : vector<4x32xf32>, vector<32x128xf32>, vector<4x128xf32> -> vector<4x128xf32>
    %282 = arith.addf %280, %281 : vector<4x128xf32>
    %283 = arith.negf %282 : vector<4x128xf32>
    %284 = math.exp %283 : vector<4x128xf32>
    %cst_92 = arith.constant 1.000000e+00 : f32
    %285 = vector.broadcast %cst_92 : f32 to vector<4x128xf32>
    %286 = arith.addf %285, %284 : vector<4x128xf32>
    %287 = arith.divf %285, %286 : vector<4x128xf32>
    %288 = math.tanh %282 : vector<4x128xf32>
    %289 = vector.extract_strided_slice %287 {offsets = [0, 0], sizes = [4, 32], strides = [1, 1]} : vector<4x128xf32> to vector<4x32xf32>
    %290 = vector.extract_strided_slice %287 {offsets = [0, 32], sizes = [4, 32], strides = [1, 1]} : vector<4x128xf32> to vector<4x32xf32>
    %291 = vector.extract_strided_slice %288 {offsets = [0, 64], sizes = [4, 32], strides = [1, 1]} : vector<4x128xf32> to vector<4x32xf32>
    %292 = vector.extract_strided_slice %287 {offsets = [0, 96], sizes = [4, 32], strides = [1, 1]} : vector<4x128xf32> to vector<4x32xf32>
    %293 = arith.mulf %290, %277 : vector<4x32xf32>
    %294 = arith.mulf %289, %291 : vector<4x32xf32>
    %295 = arith.addf %293, %294 : vector<4x32xf32>
    %296 = math.tanh %295 : vector<4x32xf32>
    %297 = arith.mulf %292, %296 : vector<4x32xf32>
    %c28_93 = arith.constant 28 : index
    %c0_94 = arith.constant 0 : index
    %298 = vector.load %arg10[%c28_93, %c0_94] : memref<32x128xf32, #tpu.memory_space<vmem>>, vector<4x128xf32>
    %cst_95 = arith.constant dense<0.000000e+00> : vector<4x128xf32>
    %299 = tpu.matmul %297, %169, %cst_95 {dimension_numbers = #tpu.dot_dimension_numbers<[1], [0], [0], [1], [0, 0, 1, 1], [], []>} : vector<4x32xf32>, vector<32x128xf32>, vector<4x128xf32> -> vector<4x128xf32>
    %300 = arith.addf %298, %299 : vector<4x128xf32>
    %301 = arith.negf %300 : vector<4x128xf32>
    %302 = math.exp %301 : vector<4x128xf32>
    %cst_96 = arith.constant 1.000000e+00 : f32
    %303 = vector.broadcast %cst_96 : f32 to vector<4x128xf32>
    %304 = arith.addf %303, %302 : vector<4x128xf32>
    %305 = arith.divf %303, %304 : vector<4x128xf32>
    %306 = math.tanh %300 : vector<4x128xf32>
    %307 = vector.extract_strided_slice %305 {offsets = [0, 0], sizes = [4, 32], strides = [1, 1]} : vector<4x128xf32> to vector<4x32xf32>
    %308 = vector.extract_strided_slice %305 {offsets = [0, 32], sizes = [4, 32], strides = [1, 1]} : vector<4x128xf32> to vector<4x32xf32>
    %309 = vector.extract_strided_slice %306 {offsets = [0, 64], sizes = [4, 32], strides = [1, 1]} : vector<4x128xf32> to vector<4x32xf32>
    %310 = vector.extract_strided_slice %305 {offsets = [0, 96], sizes = [4, 32], strides = [1, 1]} : vector<4x128xf32> to vector<4x32xf32>
    %311 = arith.mulf %308, %295 : vector<4x32xf32>
    %312 = arith.mulf %307, %309 : vector<4x32xf32>
    %313 = arith.addf %311, %312 : vector<4x32xf32>
    %314 = math.tanh %313 : vector<4x32xf32>
    %315 = arith.mulf %310, %314 : vector<4x32xf32>
    %c0_97 = arith.constant 0 : index
    %c0_98 = arith.constant 0 : index
    %316 = vector.load %arg7[%c0_97, %c0_98] : memref<32x128xf32, #tpu.memory_space<vmem>>, vector<32x128xf32>
    %cst_99 = arith.constant dense<0.000000e+00> : vector<4x128xf32>
    %317 = tpu.matmul %315, %316, %cst_99 {dimension_numbers = #tpu.dot_dimension_numbers<[1], [0], [0], [1], [0, 0, 1, 1], [], []>} : vector<4x32xf32>, vector<32x128xf32>, vector<4x128xf32> -> vector<4x128xf32>
    %c0_100 = arith.constant 0 : index
    %c0_101 = arith.constant 0 : index
    %318 = vector.load %arg8[%c0_100, %c0_101] : memref<1x128xf32, #tpu.memory_space<vmem>>, vector<1x128xf32>
    %319 = vector.broadcast %318 : vector<1x128xf32> to vector<4x128xf32>
    %320 = arith.addf %317, %319 : vector<4x128xf32>
    %c0_102 = arith.constant 0 : index
    %c0_103 = arith.constant 0 : index
    %321 = vector.load %arg9[%c0_102, %c0_103] : memref<4x128xf32, #tpu.memory_space<vmem>>, vector<4x128xf32>
    tpu.vector_store %arg9[%c0_102, %c0_103], %320 {strides = array<i32>} : memref<4x128xf32, #tpu.memory_space<vmem>>, vector<4x128xf32>,
    return
  }
}

</mosaic_0001>

<bundles_post_ra>
// kernel: tpu_custom_call.1
= control target key start
LH: loop header
LB: loop body
LE: loop exit
PB: predicated region body
PF: predicated region fallthrough
CT: control target
= control target key end

     0   :  { %14 = vsyncpa [#allocation5], 0  ;;  %s3130_s0 = inlined_call_operand.vmem [shape: f32[32,16], index: 0, kind: input, shape index: {}]   ;;  %s3131_s1 = inlined_call_operand.hbm [shape: f32[16,128], index: 1, kind: input, shape index: {}]   ;;  %s3132_s2 = inlined_call_operand.vmem [shape: f32[32,128], index: 2, kind: input, shape index: {}]   ;;  %s3133_s3 = inlined_call_operand.vmem [shape: f32[1,128], index: 3, kind: input, shape index: {}]   ;;  %s3134_s4 = inlined_call_operand.hbm [shape: f32[32,128], index: 4, kind: input, shape index: {}]   ;;  %s3135_s5 = inlined_call_operand.vmem [shape: f32[32,128], index: 5, kind: input, shape index: {}]   ;;  %s3136_s6 = inlined_call_operand.vmem [shape: f32[1,128], index: 6, kind: input, shape index: {}]   ;;  %s3137_s7 = inlined_call_operand.hbm [shape: f32[32,128], index: 7, kind: input, shape index: {}]   ;;  %s3138_s8 = inlined_call_operand.vmem [shape: f32[1,128], index: 8, kind: input, shape index: {}]   ;;  %s3139_s9 = inlined_call_operand.hbm [shape: f32[4,128], index: 9, kind: output, shape index: {}]  }
   0x1   :  { %15 = vsyncpa [#allocation8], 0 }
   0x2   :  { %16 = vsyncpa [#allocation6], 0  ;;  %s2745_s30 = smov [#allocation7]   ;;  %s2746_s11 = smov [#allocation4]  }
   0x3   :  { %s40_s10 = sshll.u32 %s2745_s30, 4  ;;  %s24_s12 = sshll.u32 %s2746_s11, 4  ;;  %s41_s10 = int_to_ptr.vmem [resolvable:$true] %s40_s10  ;;  %s2806_s12 = int_to_ptr.vmem [resolvable:$true] %s24_s12 }
   0x4   :  { %s2651_s15 = scalar_lea.hbm %s3134_s4, 512 }
   0x5   :  { %p2652_p0 = scmp.ne.s32.totalorder %s3134_s4, %s2651_s15  ;;  %p2655_p1 = scmp.lt.u32.totalorder %s2651_s15, %s3134_s4 }
   0x7   :  { %p2657_p2 = pnand %p2655_p1, %p2652_p0 }
   0x9   :  { %2660 = shalt.err (!%p2657_p2)
}
   0xa   :  { %s2661_s20 = scalar_lea.vmem %s41_s10, 512  ;;  %p2666_p4 = scmp.lt.s32.totalorder %s41_s10, %s41_s10 }
   0xb   :  { %p2662_p3 = scmp.ne.s32.totalorder %s41_s10, %s2661_s20  ;;  %p2667_p5 = scmp.lt.s32.totalorder %s2661_s20, %s2661_s20 }
   0xd   :  { %p2668_p6 = por %p2667_p5, %p2666_p4 }
   0xf   :  { %p2669_p7 = pnand %p2668_p6, %p2662_p3 }
  0x11   :  { %2672 = shalt.err (!%p2669_p7)
}
  0x12   :  { %s2747_s21 = smov 128   ;;  %s2748_s22 = smov 8  }
  0x13   :  { %46 = dma.hbm_to_vmem [thread:$0]  %s3134_s4, 512, %s41_s10, [#allocation8], %s2747_s21, %s2747_s21, %s2748_s22  }
  0x14   :  { %s2673_s27 = scalar_lea.hbm %s3131_s1, 256 }
  0x15   :  { %p2674_p8 = scmp.ne.s32.totalorder %s3131_s1, %s2673_s27  ;;  %p2677_p9 = scmp.lt.u32.totalorder %s2673_s27, %s3131_s1 }
  0x17   :  { %p2679_p10 = pnand %p2677_p9, %p2674_p8 }
  0x19   :  { %2682 = shalt.err (!%p2679_p10)
}
  0x1a   :  { %s2683_s13 = scalar_lea.vmem %s2806_s12, 256  ;;  %p2688_p12 = scmp.lt.s32.totalorder %s2806_s12, %s2806_s12 }
  0x1b   :  { %p2684_p11 = scmp.ne.s32.totalorder %s2806_s12, %s2683_s13  ;;  %p2689_p13 = scmp.lt.s32.totalorder %s2683_s13, %s2683_s13 }
  0x1d   :  { %p2690_p0 = por %p2689_p13, %p2688_p12 }
  0x1f   :  { %p2691_p1 = pnand %p2690_p0, %p2684_p11 }
  0x21   :  { %2694 = shalt.err (!%p2691_p1)
}
  0x22   :  { %30 = dma.hbm_to_vmem [thread:$0]  %s3131_s1, 256, %s2806_s12, [#allocation5], %s2747_s21, %s2747_s21, %s2748_s22  }
  0x23   :  { %s2749_s14 = smov [#allocation9]   ;;  %s2695_s18 = scalar_lea.hbm %s3137_s7, 512 }
  0x24   :  { %s56_s15 = sshll.u32 %s2749_s14, 4  ;;  %p2696_p2 = scmp.ne.s32.totalorder %s3137_s7, %s2695_s18  ;;  %s57_s15 = int_to_ptr.vmem [resolvable:$true] %s56_s15 }
  0x25   :  { %p2699_p3 = scmp.lt.u32.totalorder %s2695_s18, %s3137_s7 }
  0x27   :  { %p2701_p4 = pnand %p2699_p3, %p2696_p2 }
  0x29   :  { %2704 = shalt.err (!%p2701_p4)
}
  0x2a   :  { %s2705_s25 = scalar_lea.vmem %s57_s15, 512  ;;  %p2710_p6 = scmp.lt.s32.totalorder %s57_s15, %s57_s15 }
  0x2b   :  { %p2706_p5 = scmp.ne.s32.totalorder %s57_s15, %s2705_s25  ;;  %p2711_p7 = scmp.lt.s32.totalorder %s2705_s25, %s2705_s25 }
  0x2d   :  { %p2712_p8 = por %p2711_p7, %p2710_p6 }
  0x2f   :  { %p2713_p9 = pnand %p2712_p8, %p2706_p5 }
  0x31   :  { %2716 = shalt.err (!%p2713_p9)
}
  0x32   :  { %62 = dma.hbm_to_vmem [thread:$0]  %s3137_s7, 512, %s57_s15, [#allocation8], %s2747_s21, %s2747_s21, %s2748_s22  }
  0x33   :  { %2739 = dma.done.wait [#allocation5], 256  }
  0x34   :  { %2740 = vsyncadd [#allocation5], 4294967040 }
  0x35   :  { %2741 = dma.done.wait [#allocation8], 1024  }
  0x36   :  { %2742 = vsyncadd [#allocation8], 4294966272  ;;  %v2750_v0 = vmov 0.0|0.0   ;;  %vm2751_vm0 = vmmov 0   ;;  %v2752_v1 = vmov 0.0   ;;  %vm87_vm1 = vcmask 130048  }
  0x37   :  { %2402 = vmatprep.subr.bf16.mxu1 %v2750_v0  ;;  %2205 = vmatprep.mubr.msk.f32.mxu1 %vm2751_vm0, %v2752_v1  ;;  %v78_v2 = vld [vmem:[#allocation4] sm:$0xff]  ;;  %v79_v3 = vld [vmem:[#allocation4 + $0x8] sm:$0xff]  ;;  %v191_v9 = vld [vmem:[%s3132_s2 + $0x10] sm:$0xff]  ;;  %s2753_s15 = smov 64   ;;  %vm297_vm2 = vcmask 257024   ;;  %vm194_vm3 = vcmask 261120  }
  0x38   :  { %v74_v4 = vld [vmem:[%s3130_s0] sm:$0xff]  ;;  %v2398_v5 = vpack.c.bf16 %v79_v3, %v78_v2  ;;  %v190_v7 = vld [vmem:[%s3132_s2 + $0x8] sm:$0xff]  ;;  %v192_v10 = vld [vmem:[%s3132_s2 + $0x18] sm:$0xff]  ;;  %s2755_s21 = smov [#allocation10]  }
  0x39   :  { %2191 = vmatprep.mubr.msk.f32.mxu0 %vm87_vm1, %v74_v4  ;;  %v189_v6 = vld [vmem:[%s3132_s2] sm:$0xff]  ;;  %v75_v11 = vld [vmem:[%s3130_s0 + $0x8] sm:$0xff]  ;;  %v2883_v12 = vpack.c.bf16 %v192_v10, %v191_v9  ;;  %v76_v32 = vld [vmem:[%s3130_s0 + $0x10] sm:$0xff]  ;;  %s2036_s22 = sshll.u32 %s2755_s21, 4  ;;  %s2037_s22 = int_to_ptr.vmem [resolvable:$true] %s2036_s22 }
  0x3a   :  { %v2871_v8 = vpack.c.bf16 %v190_v7, %v189_v6  ;;  %2399 = vmatprep.subr.bf16.mxu0 %v2398_v5  ;;  %v2046_v13 = vld [vmem:[%s3133_s3] ss:$0 sm:$0xff]  ;;  %s2754_s3 = smov 32   ;;  %v77_v33 = vld [vmem:[%s3130_s0 + $0x18] sm:$0xff]  ;;  %s2717_s28 = scalar_lea.vmem %s2037_s22, 64 }
  0x3b   :  { %2401 = vmatpush3.bf16.msra.mxu0 %v2398_v5  ;;  %p2718_p10 = scmp.ne.s32.totalorder %s2037_s22, %s2717_s28  ;;  %p2722_p11 = scmp.lt.s32.totalorder %s2037_s22, %s2037_s22 }
  0x3c   :  { %2404 = vmatpush3.bf16.msra.mxu1 %v2871_v8  ;;  %2408 = vmatprep.subr.bf16.mxu0 %v2750_v0  ;;  %p2723_p12 = scmp.lt.s32.totalorder %s2717_s28, %s2717_s28 }
  0x3d   :  { %2405 = vmatprep.subr.bf16.mxu1 %v2750_v0 }
  0x3e   :  { %2192 = vmatmul.mubr.msk.f32.vlgmr.msra.gmra.mrb[0].mxu0 %vm87_vm1, %v75_v11  ;;  %p2724_p13 = por %p2723_p12, %p2722_p11 }
  0x3f   :  { %2410 = vmatpush3.bf16.msra.mxu0 %v2871_v8  ;;  %2194 = vmatprep.mubr.msk.f32.mxu0 %vm87_vm1, %v76_v32 }
  0x40   :  { %2407 = vmatpush3.bf16.msra.mxu1 %v2883_v12  ;;  %2411 = vmatprep.subr.bf16.mxu0 %v2750_v0  ;;  %p2725_p0 = pnand %p2724_p13, %p2718_p10 }
  0x41   :  { %2414 = vmatprep.subr.bf16.mxu1 %v2750_v0 }
  0x42   :  { %2195 = vmatmul.mubr.msk.f32.gmra.mrb[2].mxu0 %vm87_vm1, %v77_v33 }
  0x43   :  { %2206 = vmatmul.mubr.f32.vlgmr.msra.gmra.mrb[0].mxu1 %v2752_v1  ;;  %2413 = vmatpush3.bf16.msra.mxu0 %v2883_v12 }
  0x44   :  { %2416 = vmatpush3.bf16.msra.mxu1 %v2871_v8  ;;  %2227 = vmatprep.mubr.msk.f32.mxu1 %vm2751_vm0, %v2752_v1 }
  0x45   :  { %2417 = vmatprep.subr.bf16.mxu1 %v2750_v0  ;;  %2420 = vmatprep.subr.bf16.mxu0 %v2750_v0 }
  0x46   :  { %2216 = vmatprep.mubr.msk.f32.mxu0 %vm2751_vm0, %v2752_v1 }
  0x48   :  { %2419 = vmatpush3.bf16.msra.mxu1 %v2883_v12 }
  0x49   :  { %2426 = vmatprep.subr.bf16.mxu1 %v2750_v0 }
 0x111   :  { %v2193_v14 = vpop.f32.mrb[0].mxu0 }
 0x112   :  { %v172_v15 = vadd.f32 %v2193_v14, %v2046_v13  ;;  %v166_v16 = vpop.f32.mrb[1].mxu0 }
 0x113   :  { %v167_v17 = vadd.f32 %v2046_v13, %v166_v16 }
 0x114   :  { %186 = vst [vmem:[#allocation2 + $0x8] sm:$0xff] %v172_v15 }
 0x115   :  { %185 = vst [vmem:[#allocation2] sm:$0xff] %v167_v17  ;;  %v2196_v37 = vpop.f32.mrb[2].mxu0 }
 0x116   :  { %v264_v18 = vpop.f32.mrb[0].mxu1  ;;  %v182_v38 = vadd.f32 %v2196_v37, %v2046_v13  ;;  %v176_v39 = vpop.f32.mrb[3].mxu0 }
 0x117   :  { %v2207_v19 = vpop.f32.mrb[1].mxu1  ;;  %v177_v40 = vadd.f32 %v2046_v13, %v176_v39 }
 0x118   :  { %188 = vst [vmem:[#allocation2 + $0x18] sm:$0xff] %v182_v38 }
 0x119   :  { %187 = vst [vmem:[#allocation2 + $0x10] sm:$0xff] %v177_v40 }
 0x11b   :  { %v402_v60 = vld [vmem:[#allocation2 + $0x8] sm:$0xf] }
 0x11c   :  { %v193_v20 = vld [vmem:[#allocation2] sm:$0xf]  ;;  %v299_v42 = vld [vmem:[#allocation2 + $0x4] sm:$0xf] }
 0x11d   :  { %v268_v21 = vadd.f32 %v264_v18, %v193_v20  ;;  %v505_v18 = vld [vmem:[#allocation2 + $0xc] sm:$0xf] }
 0x11f   :  { %2523 = vtanh.f32 %v268_v21  ;;  %v2051_v23 = vmul.f32 -1.442695, %v268_v21 }
 0x121   :  { %2525 = vpow2.f32 %v2051_v23 }
 0x129   :  { %v2524_v22 = vpop.eup %2523 }
 0x12a   :  { %278 = vrot.lane.b32.xlu0 %v2524_v22, %s2753_s15 }
 0x12b   :  { %v2526_v24 = vpop.eup %2525 }
 0x12c   :  { %v272_v25 = vadd.f32 1.0, %v2526_v24 }
 0x12e   :  { %2527 = vrcp.f32 %v272_v25 }
 0x138   :  { %v2528_v26 = vpop.eup %2527 }
 0x139   :  { %v276_v29 = vmul.f32 0.0, %v2528_v26 }
 0x19c   :  { %v279_v27 = vpop.permute.xlu0 %278 }
 0x19d   :  { %v281_v28 = vmul.f32 %v2528_v26, %v279_v27 }
 0x19f   :  { %283 = vrot.lane.b32.xlu0 %v281_v28, %s2754_s3 }
 0x211   :  { %v284_v30 = vpop.permute.xlu0 %283 }
 0x212   :  { %v286_v31 = vadd.f32 %v284_v30, %v276_v29 }
 0x214   :  { %2529 = vtanh.f32 %v286_v31 }
 0x21e   :  { %v2530_v34 = vpop.eup %2529 }
 0x21f   :  { %289 = vrot.lane.b32.xlu1 %v2530_v34, %s2753_s15 }
 0x291   :  { %v290_v35 = vpop.permute.xlu1 %289 }
 0x292   :  { %v292_v36 = vmul.f32 %v2528_v26, %v290_v35 }
 0x294   :  { %294 = vrot.lane.b32.xlu1 %v292_v36, %s2754_s3  ;;  %v608_v36 = vld [vmem:[#allocation2 + $0x10] sm:$0xf] }
 0x306   :  { %v295_v41 = vpop.permute.xlu1 %294 }
 0x307   :  { %298 = vst.msk [vmem:[#allocation3] sm:$0xf] %vm297_vm2, %v295_v41  ;;  %2217 = vmatmul.mubr.msk.f32.vlgmr.msra.gmra.mrb[4].mxu0 %vm194_vm3, %v295_v41 }
 0x308   :  { %2422 = vmatpush3.bf16.msra.mxu0 %v2871_v8  ;;  %2238 = vmatprep.mubr.msk.f32.mxu0 %vm2751_vm0, %v2752_v1 }
 0x309   :  { %2423 = vmatprep.subr.bf16.mxu0 %v2750_v0 }
 0x30c   :  { %2425 = vmatpush3.bf16.msra.mxu0 %v2883_v12 }
 0x30d   :  { %2432 = vmatprep.subr.bf16.mxu0 %v2750_v0 }
 0x3da   :  { %v368_v43 = vpop.f32.mrb[4].mxu0 }
 0x3db   :  { %v372_v44 = vadd.f32 %v368_v43, %v299_v42  ;;  %v2218_v45 = vpop.f32.mrb[5].mxu0 }
 0x3dd   :  { %2531 = vtanh.f32 %v372_v44  ;;  %v2053_v47 = vmul.f32 -1.442695, %v372_v44 }
 0x3df   :  { %2533 = vpow2.f32 %v2053_v47 }
 0x3e7   :  { %v2532_v46 = vpop.eup %2531 }
 0x3e8   :  { %382 = vrot.lane.b32.xlu0 %v2532_v46, %s2753_s15 }
 0x3e9   :  { %v2534_v48 = vpop.eup %2533 }
 0x3ea   :  { %v376_v49 = vadd.f32 1.0, %v2534_v48 }
 0x3ec   :  { %2535 = vrcp.f32 %v376_v49 }
 0x3f6   :  { %v2536_v50 = vpop.eup %2535 }
 0x3f7   :  { %v380_v53 = vmul.f32 %v2536_v50, %v286_v31 }
 0x45a   :  { %v383_v51 = vpop.permute.xlu0 %382 }
 0x45b   :  { %v385_v52 = vmul.f32 %v2536_v50, %v383_v51 }
 0x45d   :  { %387 = vrot.lane.b32.xlu1 %v385_v52, %s2754_s3 }
 0x4cf   :  { %v388_v54 = vpop.permute.xlu1 %387 }
 0x4d0   :  { %v390_v55 = vadd.f32 %v388_v54, %v380_v53  ;;  %v711_v54 = vld [vmem:[#allocation2 + $0x14] sm:$0xf] }
 0x4d2   :  { %2537 = vtanh.f32 %v390_v55 }
 0x4dc   :  { %v2538_v56 = vpop.eup %2537 }
 0x4dd   :  { %393 = vrot.lane.b32.xlu0 %v2538_v56, %s2753_s15 }
 0x54f   :  { %v394_v57 = vpop.permute.xlu0 %393 }
 0x550   :  { %v396_v58 = vmul.f32 %v2536_v50, %v394_v57 }
 0x552   :  { %398 = vrot.lane.b32.xlu1 %v396_v58, %s2754_s3 }
 0x5c4   :  { %v399_v59 = vpop.permute.xlu1 %398 }
 0x5c5   :  { %401 = vst.msk [vmem:[#allocation3 + $0x4] sm:$0xf] %vm297_vm2, %v399_v59  ;;  %2228 = vmatmul.mubr.msk.f32.vlgmr.msra.gmra.mrb[2].mxu1 %vm194_vm3, %v399_v59 }
 0x5c6   :  { %2428 = vmatpush3.bf16.msra.mxu1 %v2871_v8  ;;  %2249 = vmatprep.mubr.msk.f32.mxu1 %vm2751_vm0, %v2752_v1 }
 0x5c7   :  { %2429 = vmatprep.subr.bf16.mxu1 %v2750_v0 }
 0x5ca   :  { %2431 = vmatpush3.bf16.msra.mxu1 %v2883_v12 }
 0x5cb   :  { %2438 = vmatprep.subr.bf16.mxu1 %v2750_v0 }
 0x698   :  { %v471_v61 = vpop.f32.mrb[2].mxu1 }
 0x699   :  { %v475_v62 = vadd.f32 %v471_v61, %v402_v60  ;;  %v2229_v63 = vpop.f32.mrb[3].mxu1 }
 0x69b   :  { %2539 = vtanh.f32 %v475_v62  ;;  %v2055_v3 = vmul.f32 -1.442695, %v475_v62 }
 0x69d   :  { %2541 = vpow2.f32 %v2055_v3 }
 0x6a5   :  { %v2540_v2 = vpop.eup %2539 }
 0x6a6   :  { %485 = vrot.lane.b32.xlu0 %v2540_v2, %s2753_s15 }
 0x6a7   :  { %v2542_v4 = vpop.eup %2541 }
 0x6a8   :  { %v479_v5 = vadd.f32 1.0, %v2542_v4  ;;  %v1024_v4 = vld [vmem:[#allocation7] sm:$0xff] }
 0x6aa   :  { %2543 = vrcp.f32 %v479_v5  ;;  %v1025_v5 = vld [vmem:[#allocation7 + $0x8] sm:$0xff] }
 0x6b4   :  { %v2544_v6 = vpop.eup %2543 }
 0x6b5   :  { %v483_v10 = vmul.f32 %v2544_v6, %v390_v55 }
 0x718   :  { %v486_v7 = vpop.permute.xlu0 %485 }
 0x719   :  { %v488_v9 = vmul.f32 %v2544_v6, %v486_v7 }
 0x71b   :  { %490 = vrot.lane.b32.xlu1 %v488_v9, %s2754_s3 }
 0x78d   :  { %v491_v11 = vpop.permute.xlu1 %490 }
 0x78e   :  { %v493_v13 = vadd.f32 %v491_v11, %v483_v10  ;;  %v1026_v11 = vld [vmem:[#allocation7 + $0x10] sm:$0xff] }
 0x790   :  { %2545 = vtanh.f32 %v493_v13 }
 0x79a   :  { %v2546_v14 = vpop.eup %2545 }
 0x79b   :  { %496 = vrot.lane.b32.xlu0 %v2546_v14, %s2753_s15 }
 0x80d   :  { %v497_v15 = vpop.permute.xlu0 %496 }
 0x80e   :  { %v499_v16 = vmul.f32 %v2544_v6, %v497_v15  ;;  %v2450_v6 = vpack.c.bf16 %v1025_v5, %v1024_v4 }
 0x810   :  { %501 = vrot.lane.b32.xlu1 %v499_v16, %s2754_s3  ;;  %v1020_v16 = vld [vmem:[#allocation3] sm:$0xff] }
 0x882   :  { %v502_v17 = vpop.permute.xlu1 %501 }
 0x883   :  { %504 = vst.msk [vmem:[#allocation3 + $0x8] sm:$0xf] %vm297_vm2, %v502_v17  ;;  %2239 = vmatmul.mubr.msk.f32.vlgmr.msra.gmra.mrb[6].mxu0 %vm194_vm3, %v502_v17 }
 0x884   :  { %2434 = vmatpush3.bf16.msra.mxu0 %v2871_v8  ;;  %2260 = vmatprep.mubr.msk.f32.mxu0 %vm2751_vm0, %v2752_v1 }
 0x885   :  { %2435 = vmatprep.subr.bf16.mxu0 %v2750_v0 }
 0x888   :  { %2437 = vmatpush3.bf16.msra.mxu0 %v2883_v12 }
 0x889   :  { %2444 = vmatprep.subr.bf16.mxu0 %v2750_v0 }
 0x956   :  { %v574_v19 = vpop.f32.mrb[6].mxu0 }
 0x957   :  { %v578_v20 = vadd.f32 %v574_v19, %v505_v18  ;;  %v2240_v21 = vpop.f32.mrb[7].mxu0  ;;  %v814_v19 = vld [vmem:[#allocation2 + $0x18] sm:$0xf] }
 0x959   :  { %2547 = vtanh.f32 %v578_v20  ;;  %v2057_v23 = vmul.f32 -1.442695, %v578_v20 }
 0x95b   :  { %2549 = vpow2.f32 %v2057_v23  ;;  %v2986_v23 = vld [vmem:[%s3136_s6] ss:$0 sm:$0xff] }
 0x963   :  { %v2548_v22 = vpop.eup %2547 }
 0x964   :  { %588 = vrot.lane.b32.xlu0 %v2548_v22, %s2753_s15 }
 0x965   :  { %v2550_v24 = vpop.eup %2549 }
 0x966   :  { %v582_v25 = vadd.f32 1.0, %v2550_v24 }
 0x968   :  { %2551 = vrcp.f32 %v582_v25 }
 0x972   :  { %v2552_v26 = vpop.eup %2551 }
 0x973   :  { %v586_v29 = vmul.f32 %v2552_v26, %v493_v13  ;;  %v1027_v13 = vld [vmem:[#allocation7 + $0x18] sm:$0xff] }
 0x974   :  { %v2454_v14 = vpack.c.bf16 %v1027_v13, %v1026_v11 }
 0x9d6   :  { %v589_v27 = vpop.permute.xlu0 %588 }
 0x9d7   :  { %v591_v28 = vmul.f32 %v2552_v26, %v589_v27 }
 0x9d9   :  { %593 = vrot.lane.b32.xlu1 %v591_v28, %s2754_s3 }
 0xa4b   :  { %v594_v30 = vpop.permute.xlu1 %593 }
 0xa4c   :  { %v596_v31 = vadd.f32 %v594_v30, %v586_v29 }
 0xa4e   :  { %2553 = vtanh.f32 %v596_v31 }
 0xa58   :  { %v2554_v32 = vpop.eup %2553 }
 0xa59   :  { %599 = vrot.lane.b32.xlu0 %v2554_v32, %s2753_s15 }
 0xacb   :  { %v600_v33 = vpop.permute.xlu0 %599 }
 0xacc   :  { %v602_v34 = vmul.f32 %v2552_v26, %v600_v33 }
 0xace   :  { %604 = vrot.lane.b32.xlu1 %v602_v34, %s2754_s3 }
 0xb40   :  { %v605_v35 = vpop.permute.xlu1 %604 }
 0xb41   :  { %607 = vst.msk [vmem:[#allocation3 + $0xc] sm:$0xf] %vm297_vm2, %v605_v35  ;;  %2250 = vmatmul.mubr.msk.f32.vlgmr.msra.gmra.mrb[4].mxu1 %vm194_vm3, %v605_v35 }
 0xb42   :  { %2440 = vmatpush3.bf16.msra.mxu1 %v2871_v8  ;;  %2271 = vmatprep.mubr.msk.f32.mxu1 %vm2751_vm0, %v2752_v1 }
 0xb43   :  { %2441 = vmatprep.subr.bf16.mxu1 %v2750_v0 }
 0xb46   :  { %2443 = vmatpush3.bf16.msra.mxu1 %v2883_v12 }
 0xb47   :  { %2451 = vmatprep.subr.bf16.mxu1 %v2450_v6 }
 0xb48   :  { %v1021_v17 = vld [vmem:[#allocation3 + $0x8] sm:$0xff] }
 0xc14   :  { %v677_v37 = vpop.f32.mrb[4].mxu1 }
 0xc15   :  { %v681_v38 = vadd.f32 %v677_v37, %v608_v36  ;;  %v2251_v39 = vpop.f32.mrb[5].mxu1 }
 0xc16   :  { %v1136_v39 = vld [vmem:[%s3135_s5] sm:$0xff] }
 0xc17   :  { %2555 = vtanh.f32 %v681_v38  ;;  %v2059_v41 = vmul.f32 -1.442695, %v681_v38 }
 0xc19   :  { %2557 = vpow2.f32 %v2059_v41 }
 0xc21   :  { %v2556_v40 = vpop.eup %2555 }
 0xc22   :  { %691 = vrot.lane.b32.xlu0 %v2556_v40, %s2753_s15  ;;  %v1137_v40 = vld [vmem:[%s3135_s5 + $0x8] sm:$0xff] }
 0xc23   :  { %v2558_v42 = vpop.eup %2557  ;;  %v3002_v41 = vpack.c.bf16 %v1137_v40, %v1136_v39 }
 0xc24   :  { %v685_v43 = vadd.f32 1.0, %v2558_v42  ;;  %v1138_v42 = vld [vmem:[%s3135_s5 + $0x10] sm:$0xff] }
 0xc26   :  { %2559 = vrcp.f32 %v685_v43  ;;  %v1139_v43 = vld [vmem:[%s3135_s5 + $0x18] sm:$0xff] }
 0xc30   :  { %v2560_v44 = vpop.eup %2559 }
 0xc31   :  { %v689_v47 = vmul.f32 %v2560_v44, %v596_v31 }
 0xc94   :  { %v692_v45 = vpop.permute.xlu0 %691 }
 0xc95   :  { %v694_v46 = vmul.f32 %v2560_v44, %v692_v45 }
 0xc97   :  { %696 = vrot.lane.b32.xlu1 %v694_v46, %s2754_s3 }
 0xd09   :  { %v697_v48 = vpop.permute.xlu1 %696 }
 0xd0a   :  { %v699_v49 = vadd.f32 %v697_v48, %v689_v47  ;;  %v917_v48 = vld [vmem:[#allocation2 + $0x1c] sm:$0xf] }
 0xd0c   :  { %2561 = vtanh.f32 %v699_v49 }
 0xd16   :  { %v2562_v50 = vpop.eup %2561 }
 0xd17   :  { %702 = vrot.lane.b32.xlu0 %v2562_v50, %s2753_s15 }
 0xd89   :  { %v703_v51 = vpop.permute.xlu0 %702 }
 0xd8a   :  { %v705_v52 = vmul.f32 %v2560_v44, %v703_v51  ;;  %v3012_v44 = vpack.c.bf16 %v1139_v43, %v1138_v42 }
 0xd8c   :  { %707 = vrot.lane.b32.xlu1 %v705_v52, %s2754_s3 }
 0xdfe   :  { %v708_v53 = vpop.permute.xlu1 %707 }
 0xdff   :  { %710 = vst.msk [vmem:[#allocation3 + $0x10] sm:$0xf] %vm297_vm2, %v708_v53  ;;  %2261 = vmatmul.mubr.msk.f32.vlgmr.msra.gmra.mrb[8].mxu0 %vm194_vm3, %v708_v53 }
 0xe00   :  { %2446 = vmatpush3.bf16.msra.mxu0 %v2871_v8  ;;  %2282 = vmatprep.mubr.msk.f32.mxu0 %vm2751_vm0, %v2752_v1 }
 0xe01   :  { %2447 = vmatprep.subr.bf16.mxu0 %v2750_v0 }
 0xe04   :  { %2449 = vmatpush3.bf16.msra.mxu0 %v2883_v12 }
 0xe05   :  { %2458 = vmatprep.subr.bf16.mxu0 %v2750_v0 }
 0xed2   :  { %v780_v55 = vpop.f32.mrb[8].mxu0 }
 0xed3   :  { %v784_v56 = vadd.f32 %v780_v55, %v711_v54  ;;  %v2262_v57 = vpop.f32.mrb[9].mxu0 }
 0xed5   :  { %2563 = vtanh.f32 %v784_v56  ;;  %v2061_v59 = vmul.f32 -1.442695, %v784_v56 }
 0xed7   :  { %2565 = vpow2.f32 %v2061_v59 }
 0xedf   :  { %v2564_v58 = vpop.eup %2563 }
 0xee0   :  { %794 = vrot.lane.b32.xlu0 %v2564_v58, %s2753_s15 }
 0xee1   :  { %v2566_v8 = vpop.eup %2565 }
 0xee2   :  { %v788_v60 = vadd.f32 1.0, %v2566_v8 }
 0xee4   :  { %2567 = vrcp.f32 %v788_v60 }
 0xeee   :  { %v2568_v61 = vpop.eup %2567 }
 0xeef   :  { %v792_v12 = vmul.f32 %v2568_v61, %v699_v49 }
 0xf52   :  { %v795_v62 = vpop.permute.xlu0 %794 }
 0xf53   :  { %v797_v63 = vmul.f32 %v2568_v61, %v795_v62 }
 0xf55   :  { %799 = vrot.lane.b32.xlu1 %v797_v63, %s2754_s3 }
 0xfc7   :  { %v800_v2 = vpop.permute.xlu1 %799 }
 0xfc8   :  { %v802_v3 = vadd.f32 %v800_v2, %v792_v12 }
 0xfca   :  { %2569 = vtanh.f32 %v802_v3 }
 0xfd4   :  { %v2570_v7 = vpop.eup %2569 }
 0xfd5   :  { %805 = vrot.lane.b32.xlu0 %v2570_v7, %s2753_s15 }
0x1047   :  { %v806_v9 = vpop.permute.xlu0 %805 }
0x1048   :  { %v808_v10 = vmul.f32 %v2568_v61, %v806_v9 }
0x104a   :  { %810 = vrot.lane.b32.xlu1 %v808_v10, %s2754_s3 }
0x10bc   :  { %v811_v15 = vpop.permute.xlu1 %810 }
0x10bd   :  { %813 = vst.msk [vmem:[#allocation3 + $0x14] sm:$0xf] %vm297_vm2, %v811_v15  ;;  %2272 = vmatmul.mubr.msk.f32.vlgmr.msra.gmra.mrb[6].mxu1 %vm194_vm3, %v811_v15 }
0x10be   :  { %2453 = vmatpush3.bf16.msra.mxu1 %v2450_v6  ;;  %2293 = vmatprep.mubr.msk.f32.mxu1 %vm194_vm3, %v1020_v16 }
0x10bf   :  { %2455 = vmatprep.subr.bf16.mxu1 %v2454_v14 }
0x10c2   :  { %2457 = vmatpush3.bf16.msra.mxu1 %v2454_v14 }
0x10c3   :  { %2464 = vmatprep.subr.bf16.mxu1 %v2750_v0 }
0x10c4   :  { %v1022_v18 = vld [vmem:[#allocation3 + $0x10] sm:$0xff] }
0x10c5   :  { %2294 = vmatmul.mubr.msk.f32.vlgmr.msra.gmra.mrb[8].mxu1 %vm194_vm3, %v1021_v17 }
0x10c6   :  { %2296 = vmatprep.mubr.msk.f32.mxu1 %vm194_vm3, %v1022_v18  ;;  %2466 = vmatpush3.bf16.msra.mxu1 %v3002_v41 }
0x10c7   :  { %2467 = vmatprep.subr.bf16.mxu1 %v2750_v0 }
0x10ca   :  { %2469 = vmatpush3.bf16.msra.mxu1 %v3012_v44 }
0x10cb   :  { %2476 = vmatprep.subr.bf16.mxu1 %v2750_v0 }
0x1190   :  { %v883_v20 = vpop.f32.mrb[6].mxu1 }
0x1191   :  { %v887_v21 = vadd.f32 %v883_v20, %v814_v19  ;;  %v2273_v22 = vpop.f32.mrb[7].mxu1 }
0x1193   :  { %2571 = vtanh.f32 %v887_v21  ;;  %v2063_v29 = vmul.f32 -1.442695, %v887_v21 }
0x1195   :  { %2573 = vpow2.f32 %v2063_v29 }
0x1198   :  { %v2295_v24 = vpop.f32.mrb[8].mxu1 }
0x1199   :  { %v1119_v25 = vadd.f32 %v2295_v24, %v2986_v23  ;;  %v1113_v26 = vpop.f32.mrb[9].mxu1 }
0x119a   :  { %v1114_v27 = vadd.f32 %v2986_v23, %v1113_v26 }
0x119b   :  { %1133 = vst [vmem:[#allocation2 + $0x8] sm:$0xff] %v1119_v25 }
0x119c   :  { %1132 = vst [vmem:[#allocation2] sm:$0xff] %v1114_v27 }
0x119d   :  { %v2572_v28 = vpop.eup %2571 }
0x119e   :  { %897 = vrot.lane.b32.xlu0 %v2572_v28, %s2753_s15 }
0x119f   :  { %v2574_v30 = vpop.eup %2573 }
0x11a0   :  { %v891_v31 = vadd.f32 1.0, %v2574_v30 }
0x11a2   :  { %2575 = vrcp.f32 %v891_v31 }
0x11a3   :  { %v1140_v52 = vld [vmem:[#allocation2] sm:$0xf]  ;;  %v1236_v28 = vld [vmem:[#allocation2 + $0x4] sm:$0xf] }
0x11ac   :  { %v2576_v32 = vpop.eup %2575 }
0x11ad   :  { %v895_v35 = vmul.f32 %v2576_v32, %v802_v3 }
0x1210   :  { %v898_v33 = vpop.permute.xlu0 %897 }
0x1211   :  { %v900_v34 = vmul.f32 %v2576_v32, %v898_v33 }
0x1213   :  { %902 = vrot.lane.b32.xlu1 %v900_v34, %s2754_s3 }
0x1285   :  { %v903_v36 = vpop.permute.xlu1 %902 }
0x1286   :  { %v2992_v37 = vadd.f32 %v903_v36, %v895_v35 }
0x1288   :  { %2577 = vtanh.f32 %v2992_v37 }
0x1292   :  { %v2578_v38 = vpop.eup %2577 }
0x1293   :  { %908 = vrot.lane.b32.xlu0 %v2578_v38, %s2753_s15 }
0x1305   :  { %v909_v45 = vpop.permute.xlu0 %908 }
0x1306   :  { %v911_v46 = vmul.f32 %v2576_v32, %v909_v45 }
0x1308   :  { %913 = vrot.lane.b32.xlu1 %v911_v46, %s2754_s3 }
0x137a   :  { %v914_v47 = vpop.permute.xlu1 %913 }
0x137b   :  { %916 = vst.msk [vmem:[#allocation3 + $0x18] sm:$0xf] %vm297_vm2, %v914_v47  ;;  %2283 = vmatmul.mubr.msk.f32.vlgmr.msra.gmra.mrb[10].mxu0 %vm194_vm3, %v914_v47  ;;  %v1337_v47 = vld [vmem:[#allocation2 + $0x8] sm:$0xf] }
0x137c   :  { %2460 = vmatpush3.bf16.msra.mxu0 %v3002_v41  ;;  %2307 = vmatprep.mubr.msk.f32.mxu0 %vm2751_vm0, %v2752_v1 }
0x137d   :  { %2461 = vmatprep.subr.bf16.mxu0 %v2750_v0 }
0x1380   :  { %2463 = vmatpush3.bf16.msra.mxu0 %v3012_v44 }
0x1381   :  { %2470 = vmatprep.subr.bf16.mxu0 %v2750_v0 }
0x1383   :  { %2308 = vmatmul.mubr.f32.vlgmr.msra.gmra.mrb[12].mxu0 %v2752_v1 }
0x1384   :  { %2472 = vmatpush3.bf16.msra.mxu0 %v3002_v41  ;;  %2329 = vmatprep.mubr.msk.f32.mxu0 %vm2751_vm0, %v2752_v1 }
0x1385   :  { %2473 = vmatprep.subr.bf16.mxu0 %v2750_v0 }
0x1388   :  { %2475 = vmatpush3.bf16.msra.mxu0 %v3012_v44 }
0x1389   :  { %2482 = vmatprep.subr.bf16.mxu0 %v2750_v0 }
0x144e   :  { %v986_v49 = vpop.f32.mrb[10].mxu0 }
0x144f   :  { %v990_v50 = vadd.f32 %v986_v49, %v917_v48  ;;  %v2284_v51 = vpop.f32.mrb[11].mxu0 }
0x1451   :  { %2579 = vtanh.f32 %v990_v50  ;;  %v2065_v58 = vmul.f32 -1.442695, %v990_v50 }
0x1456   :  { %v1207_v53 = vpop.f32.mrb[12].mxu0 }
0x1457   :  { %v1211_v54 = vadd.f32 %v1207_v53, %v1140_v52  ;;  %v2309_v55 = vpop.f32.mrb[13].mxu0 }
0x1459   :  { %2581 = vtanh.f32 %v1211_v54  ;;  %v2071_v59 = vmul.f32 -1.442695, %v1211_v54 }
0x145a   :  { %2583 = vpow2.f32 %v2065_v58 }
0x145b   :  { %v2580_v56 = vpop.eup %2579  ;;  %2585 = vpow2.f32 %v2071_v59 }
0x145c   :  { %1000 = vrot.lane.b32.xlu0 %v2580_v56, %s2753_s15 }
0x1463   :  { %v2582_v57 = vpop.eup %2581 }
0x1464   :  { %1221 = vrot.lane.b32.xlu1 %v2582_v57, %s2753_s15  ;;  %v2584_v8 = vpop.eup %2583 }
0x1465   :  { %v994_v60 = vadd.f32 1.0, %v2584_v8  ;;  %v2586_v61 = vpop.eup %2585 }
0x1466   :  { %v1215_v62 = vadd.f32 1.0, %v2586_v61 }
0x1467   :  { %2587 = vrcp.f32 %v994_v60 }
0x1468   :  { %2589 = vrcp.f32 %v1215_v62 }
0x1471   :  { %v2588_v63 = vpop.eup %2587 }
0x1472   :  { %v2590_v3 = vpop.eup %2589  ;;  %v998_v6 = vmul.f32 %v2588_v63, %v2992_v37 }
0x1473   :  { %v1219_v10 = vmul.f32 0.0, %v2590_v3 }
0x14ce   :  { %v1001_v12 = vpop.permute.xlu0 %1000 }
0x14cf   :  { %v1003_v2 = vmul.f32 %v2588_v63, %v1001_v12  ;;  %v1438_v12 = vld [vmem:[#allocation2 + $0xc] sm:$0xf] }
0x14d1   :  { %1005 = vrot.lane.b32.xlu0 %v1003_v2, %s2754_s3 }
0x14d6   :  { %v1222_v4 = vpop.permute.xlu1 %1221 }
0x14d7   :  { %v1224_v5 = vmul.f32 %v2590_v3, %v1222_v4 }
0x14d9   :  { %1226 = vrot.lane.b32.xlu1 %v1224_v5, %s2754_s3 }
0x1543   :  { %v1006_v7 = vpop.permute.xlu0 %1005 }
0x1544   :  { %v1008_v9 = vadd.f32 %v1006_v7, %v998_v6 }
0x1546   :  { %2591 = vtanh.f32 %v1008_v9 }
0x154b   :  { %v1227_v11 = vpop.permute.xlu1 %1226 }
0x154c   :  { %v1229_v13 = vadd.f32 %v1227_v11, %v1219_v10 }
0x154e   :  { %2593 = vtanh.f32 %v1229_v13 }
0x1550   :  { %v2592_v14 = vpop.eup %2591 }
0x1551   :  { %1011 = vrot.lane.b32.xlu0 %v2592_v14, %s2753_s15 }
0x1558   :  { %v2594_v15 = vpop.eup %2593 }
0x1559   :  { %1232 = vrot.lane.b32.xlu1 %v2594_v15, %s2753_s15 }
0x15c3   :  { %v1012_v16 = vpop.permute.xlu0 %1011 }
0x15c4   :  { %v1014_v17 = vmul.f32 %v2588_v63, %v1012_v16 }
0x15c6   :  { %1016 = vrot.lane.b32.xlu0 %v1014_v17, %s2754_s3 }
0x15cb   :  { %v1233_v18 = vpop.permute.xlu1 %1232 }
0x15cc   :  { %v1235_v19 = vmul.f32 %v2590_v3, %v1233_v18 }
0x15ce   :  { %1238 = vrot.lane.b32.xlu1 %v1235_v19, %s2754_s3 }
0x1638   :  { %v1017_v20 = vpop.permute.xlu0 %1016 }
0x1639   :  { %1019 = vst.msk [vmem:[#allocation3 + $0x1c] sm:$0xf] %vm297_vm2, %v1017_v20 }
0x1640   :  { %v1023_v21 = vld [vmem:[#allocation3 + $0x18] sm:$0xff]  ;;  %v1239_v22 = vpop.permute.xlu1 %1238 }
0x1641   :  { %2297 = vmatmul.mubr.msk.f32.gmra.mrb[10].mxu1 %vm194_vm3, %v1023_v21 }
0x1642   :  { %2318 = vmatprep.mubr.msk.f32.mxu1 %vm2751_vm0, %v2752_v1 }
0x1645   :  { %2319 = vmatmul.mubr.msk.f32.vlgmr.msra.gmra.mrb[12].mxu1 %vm194_vm3, %v1239_v22 }
0x1646   :  { %2478 = vmatpush3.bf16.msra.mxu1 %v3002_v41  ;;  %2340 = vmatprep.mubr.msk.f32.mxu1 %vm2751_vm0, %v2752_v1 }
0x1647   :  { %2479 = vmatprep.subr.bf16.mxu1 %v2750_v0 }
0x164a   :  { %2481 = vmatpush3.bf16.msra.mxu1 %v3012_v44 }
0x164b   :  { %2488 = vmatprep.subr.bf16.mxu1 %v2750_v0 }
0x1714   :  { %v2298_v24 = vpop.f32.mrb[10].mxu1 }
0x1715   :  { %v1129_v25 = vadd.f32 %v2298_v24, %v2986_v23  ;;  %v1123_v26 = vpop.f32.mrb[11].mxu1 }
0x1716   :  { %v1124_v27 = vadd.f32 %v2986_v23, %v1123_v26 }
0x1717   :  { %1135 = vst [vmem:[#allocation2 + $0x18] sm:$0xff] %v1129_v25 }
0x1718   :  { %1134 = vst [vmem:[#allocation2 + $0x10] sm:$0xff] %v1124_v27  ;;  %v1308_v29 = vpop.f32.mrb[12].mxu1 }
0x1719   :  { %v1312_v30 = vadd.f32 %v1308_v29, %v1236_v28  ;;  %v2320_v31 = vpop.f32.mrb[13].mxu1 }
0x171b   :  { %2595 = vtanh.f32 %v1312_v30  ;;  %v2073_v33 = vmul.f32 -1.442695, %v1312_v30 }
0x171d   :  { %2597 = vpow2.f32 %v2073_v33 }
0x171f   :  { %v1539_v21 = vld [vmem:[#allocation2 + $0x10] sm:$0xf] }
0x1725   :  { %v2596_v32 = vpop.eup %2595 }
0x1726   :  { %1322 = vrot.lane.b32.xlu0 %v2596_v32, %s2753_s15 }
0x1727   :  { %v2598_v34 = vpop.eup %2597 }
0x1728   :  { %v1316_v35 = vadd.f32 1.0, %v2598_v34 }
0x172a   :  { %2599 = vrcp.f32 %v1316_v35 }
0x1734   :  { %v2600_v36 = vpop.eup %2599 }
0x1735   :  { %v1320_v23 = vmul.f32 %v2600_v36, %v1229_v13 }
0x1798   :  { %v1323_v37 = vpop.permute.xlu0 %1322 }
0x1799   :  { %v1325_v38 = vmul.f32 %v2600_v36, %v1323_v37 }
0x179b   :  { %1327 = vrot.lane.b32.xlu1 %v1325_v38, %s2754_s3 }
0x180d   :  { %v1328_v39 = vpop.permute.xlu1 %1327 }
0x180e   :  { %v1330_v40 = vadd.f32 %v1328_v39, %v1320_v23  ;;  %v1640_v39 = vld [vmem:[#allocation2 + $0x14] sm:$0xf] }
0x1810   :  { %2601 = vtanh.f32 %v1330_v40 }
0x181a   :  { %v2602_v42 = vpop.eup %2601 }
0x181b   :  { %1333 = vrot.lane.b32.xlu0 %v2602_v42, %s2753_s15 }
0x188d   :  { %v1334_v43 = vpop.permute.xlu0 %1333 }
0x188e   :  { %v1336_v45 = vmul.f32 %v2600_v36, %v1334_v43 }
0x1890   :  { %1339 = vrot.lane.b32.xlu1 %v1336_v45, %s2754_s3 }
0x1902   :  { %v1340_v46 = vpop.permute.xlu1 %1339 }
0x1903   :  { %2330 = vmatmul.mubr.msk.f32.vlgmr.msra.gmra.mrb[14].mxu0 %vm194_vm3, %v1340_v46 }
0x1904   :  { %2484 = vmatpush3.bf16.msra.mxu0 %v3002_v41  ;;  %2351 = vmatprep.mubr.msk.f32.mxu0 %vm2751_vm0, %v2752_v1 }
0x1905   :  { %2485 = vmatprep.subr.bf16.mxu0 %v2750_v0 }
0x1908   :  { %2487 = vmatpush3.bf16.msra.mxu0 %v3012_v44 }
0x1909   :  { %2494 = vmatprep.subr.bf16.mxu0 %v2750_v0 }
0x19d6   :  { %v1409_v48 = vpop.f32.mrb[14].mxu0 }
0x19d7   :  { %v1413_v49 = vadd.f32 %v1409_v48, %v1337_v47  ;;  %v2331_v50 = vpop.f32.mrb[15].mxu0 }
0x19d9   :  { %2603 = vtanh.f32 %v1413_v49  ;;  %v2075_v52 = vmul.f32 -1.442695, %v1413_v49 }
0x19db   :  { %2605 = vpow2.f32 %v2075_v52 }
0x19e3   :  { %v2604_v51 = vpop.eup %2603 }
0x19e4   :  { %1423 = vrot.lane.b32.xlu0 %v2604_v51, %s2753_s15 }
0x19e5   :  { %v2606_v53 = vpop.eup %2605 }
0x19e6   :  { %v1417_v54 = vadd.f32 1.0, %v2606_v53 }
0x19e8   :  { %2607 = vrcp.f32 %v1417_v54 }
0x19f2   :  { %v2608_v55 = vpop.eup %2607 }
0x19f3   :  { %v1421_v58 = vmul.f32 %v2608_v55, %v1330_v40 }
0x1a56   :  { %v1424_v56 = vpop.permute.xlu0 %1423 }
0x1a57   :  { %v1426_v57 = vmul.f32 %v2608_v55, %v1424_v56 }
0x1a59   :  { %1428 = vrot.lane.b32.xlu1 %v1426_v57, %s2754_s3  ;;  %v1741_v57 = vld [vmem:[#allocation2 + $0x18] sm:$0xf] }
0x1acb   :  { %v1429_v59 = vpop.permute.xlu1 %1428 }
0x1acc   :  { %v1431_v8 = vadd.f32 %v1429_v59, %v1421_v58 }
0x1ace   :  { %2609 = vtanh.f32 %v1431_v8 }
0x1ad8   :  { %v2610_v60 = vpop.eup %2609 }
0x1ad9   :  { %1434 = vrot.lane.b32.xlu0 %v2610_v60, %s2753_s15 }
0x1b4b   :  { %v1435_v61 = vpop.permute.xlu0 %1434 }
0x1b4c   :  { %v1437_v62 = vmul.f32 %v2608_v55, %v1435_v61 }
0x1b4e   :  { %1440 = vrot.lane.b32.xlu1 %v1437_v62, %s2754_s3 }
0x1bc0   :  { %v1441_v63 = vpop.permute.xlu1 %1440 }
0x1bc1   :  { %2341 = vmatmul.mubr.msk.f32.vlgmr.msra.gmra.mrb[14].mxu1 %vm194_vm3, %v1441_v63 }
0x1bc2   :  { %2490 = vmatpush3.bf16.msra.mxu1 %v3002_v41  ;;  %2362 = vmatprep.mubr.msk.f32.mxu1 %vm2751_vm0, %v2752_v1 }
0x1bc3   :  { %2491 = vmatprep.subr.bf16.mxu1 %v2750_v0 }
0x1bc6   :  { %2493 = vmatpush3.bf16.msra.mxu1 %v3012_v44 }
0x1bc7   :  { %2500 = vmatprep.subr.bf16.mxu1 %v2750_v0 }
0x1c94   :  { %v1510_v2 = vpop.f32.mrb[14].mxu1 }
0x1c95   :  { %v1514_v3 = vadd.f32 %v1510_v2, %v1438_v12  ;;  %v2342_v4 = vpop.f32.mrb[15].mxu1 }
0x1c97   :  { %2611 = vtanh.f32 %v1514_v3  ;;  %v2077_v6 = vmul.f32 -1.442695, %v1514_v3 }
0x1c99   :  { %2613 = vpow2.f32 %v2077_v6 }
0x1ca1   :  { %v2612_v5 = vpop.eup %2611 }
0x1ca2   :  { %1524 = vrot.lane.b32.xlu0 %v2612_v5, %s2753_s15 }
0x1ca3   :  { %v2614_v7 = vpop.eup %2613 }
0x1ca4   :  { %v1518_v9 = vadd.f32 1.0, %v2614_v7 }
0x1ca6   :  { %2615 = vrcp.f32 %v1518_v9 }
0x1cb0   :  { %v2616_v10 = vpop.eup %2615 }
0x1cb1   :  { %v1522_v14 = vmul.f32 %v2616_v10, %v1431_v8 }
0x1d14   :  { %v1525_v11 = vpop.permute.xlu0 %1524 }
0x1d15   :  { %v1527_v13 = vmul.f32 %v2616_v10, %v1525_v11  ;;  %v1842_v11 = vld [vmem:[#allocation2 + $0x1c] sm:$0xf] }
0x1d17   :  { %1529 = vrot.lane.b32.xlu1 %v1527_v13, %s2754_s3 }
0x1d89   :  { %v1530_v15 = vpop.permute.xlu1 %1529 }
0x1d8a   :  { %v1532_v16 = vadd.f32 %v1530_v15, %v1522_v14 }
0x1d8c   :  { %2617 = vtanh.f32 %v1532_v16 }
0x1d96   :  { %v2618_v17 = vpop.eup %2617 }
0x1d97   :  { %1535 = vrot.lane.b32.xlu0 %v2618_v17, %s2753_s15 }
0x1e09   :  { %v1536_v18 = vpop.permute.xlu0 %1535 }
0x1e0a   :  { %v1538_v19 = vmul.f32 %v2616_v10, %v1536_v18 }
0x1e0c   :  { %1541 = vrot.lane.b32.xlu1 %v1538_v19, %s2754_s3 }
0x1e7e   :  { %v1542_v20 = vpop.permute.xlu1 %1541 }
0x1e7f   :  { %2352 = vmatmul.mubr.msk.f32.vlgmr.msra.gmra.mrb[16].mxu0 %vm194_vm3, %v1542_v20 }
0x1e80   :  { %2496 = vmatpush3.bf16.msra.mxu0 %v3002_v41  ;;  %2373 = vmatprep.mubr.msk.f32.mxu0 %vm2751_vm0, %v2752_v1 }
0x1e81   :  { %2497 = vmatprep.subr.bf16.mxu0 %v2750_v0 }
0x1e84   :  { %2499 = vmatpush3.bf16.msra.mxu0 %v3012_v44 }
0x1e85   :  { %2506 = vmatprep.subr.bf16.mxu0 %v2750_v0 }
0x1f52   :  { %v1611_v22 = vpop.f32.mrb[16].mxu0 }
0x1f53   :  { %v1615_v24 = vadd.f32 %v1611_v22, %v1539_v21  ;;  %v2353_v25 = vpop.f32.mrb[17].mxu0 }
0x1f55   :  { %2619 = vtanh.f32 %v1615_v24  ;;  %v2079_v27 = vmul.f32 -1.442695, %v1615_v24 }
0x1f57   :  { %2621 = vpow2.f32 %v2079_v27  ;;  %v1943_v27 = vld [vmem:[#allocation9] sm:$0xff] }
0x1f5f   :  { %v2620_v26 = vpop.eup %2619 }
0x1f60   :  { %1625 = vrot.lane.b32.xlu0 %v2620_v26, %s2753_s15 }
0x1f61   :  { %v2622_v28 = vpop.eup %2621 }
0x1f62   :  { %v1619_v29 = vadd.f32 1.0, %v2622_v28  ;;  %v1944_v28 = vld [vmem:[#allocation9 + $0x8] sm:$0xff] }
0x1f64   :  { %2623 = vrcp.f32 %v1619_v29  ;;  %v1945_v29 = vld [vmem:[#allocation9 + $0x10] sm:$0xff] }
0x1f6e   :  { %v2624_v30 = vpop.eup %2623 }
0x1f6f   :  { %v1623_v33 = vmul.f32 %v2624_v30, %v1532_v16 }
0x1fd2   :  { %v1626_v31 = vpop.permute.xlu0 %1625 }
0x1fd3   :  { %v1628_v32 = vmul.f32 %v2624_v30, %v1626_v31  ;;  %v1946_v31 = vld [vmem:[#allocation9 + $0x18] sm:$0xff] }
0x1fd5   :  { %1630 = vrot.lane.b32.xlu1 %v1628_v32, %s2754_s3  ;;  %v2510_v32 = vpack.c.bf16 %v1946_v31, %v1945_v29 }
0x2047   :  { %v1631_v34 = vpop.permute.xlu1 %1630 }
0x2048   :  { %v1633_v35 = vadd.f32 %v1631_v34, %v1623_v33 }
0x204a   :  { %2625 = vtanh.f32 %v1633_v35 }
0x2054   :  { %v2626_v36 = vpop.eup %2625 }
0x2055   :  { %1636 = vrot.lane.b32.xlu0 %v2626_v36, %s2753_s15 }
0x20c7   :  { %v1637_v37 = vpop.permute.xlu0 %1636 }
0x20c8   :  { %v1639_v38 = vmul.f32 %v2624_v30, %v1637_v37  ;;  %v2507_v30 = vpack.c.bf16 %v1944_v28, %v1943_v27  ;;  %v2086_v37 = vld [vmem:[%s3138_s8] ss:$0 sm:$0xff] }
0x20ca   :  { %1642 = vrot.lane.b32.xlu1 %v1639_v38, %s2754_s3 }
0x213c   :  { %v1643_v23 = vpop.permute.xlu1 %1642 }
0x213d   :  { %2363 = vmatmul.mubr.msk.f32.vlgmr.msra.gmra.mrb[16].mxu1 %vm194_vm3, %v1643_v23 }
0x213e   :  { %2502 = vmatpush3.bf16.msra.mxu1 %v3002_v41  ;;  %2384 = vmatprep.mubr.msk.f32.mxu1 %vm2751_vm0, %v2752_v1 }
0x213f   :  { %2503 = vmatprep.subr.bf16.mxu1 %v2750_v0 }
0x2142   :  { %2505 = vmatpush3.bf16.msra.mxu1 %v3012_v44 }
0x2210   :  { %v1712_v40 = vpop.f32.mrb[16].mxu1 }
0x2211   :  { %v1716_v42 = vadd.f32 %v1712_v40, %v1640_v39  ;;  %v2364_v43 = vpop.f32.mrb[17].mxu1 }
0x2213   :  { %2627 = vtanh.f32 %v1716_v42  ;;  %v2081_v46 = vmul.f32 -1.442695, %v1716_v42 }
0x2215   :  { %2629 = vpow2.f32 %v2081_v46 }
0x221d   :  { %v2628_v45 = vpop.eup %2627 }
0x221e   :  { %1726 = vrot.lane.b32.xlu0 %v2628_v45, %s2753_s15 }
0x221f   :  { %v2630_v47 = vpop.eup %2629 }
0x2220   :  { %v1720_v48 = vadd.f32 1.0, %v2630_v47 }
0x2222   :  { %2631 = vrcp.f32 %v1720_v48 }
0x222c   :  { %v2632_v41 = vpop.eup %2631 }
0x222d   :  { %v1724_v51 = vmul.f32 %v2632_v41, %v1633_v35 }
0x2290   :  { %v1727_v49 = vpop.permute.xlu0 %1726 }
0x2291   :  { %v1729_v50 = vmul.f32 %v2632_v41, %v1727_v49 }
0x2293   :  { %1731 = vrot.lane.b32.xlu1 %v1729_v50, %s2754_s3 }
0x2305   :  { %v1732_v44 = vpop.permute.xlu1 %1731 }
0x2306   :  { %v1734_v52 = vadd.f32 %v1732_v44, %v1724_v51 }
0x2308   :  { %2633 = vtanh.f32 %v1734_v52 }
0x2312   :  { %v2634_v53 = vpop.eup %2633 }
0x2313   :  { %1737 = vrot.lane.b32.xlu0 %v2634_v53, %s2753_s15 }
0x2385   :  { %v1738_v54 = vpop.permute.xlu0 %1737 }
0x2386   :  { %v1740_v55 = vmul.f32 %v2632_v41, %v1738_v54 }
0x2388   :  { %1743 = vrot.lane.b32.xlu1 %v1740_v55, %s2754_s3 }
0x23fa   :  { %v1744_v56 = vpop.permute.xlu1 %1743 }
0x23fb   :  { %2374 = vmatmul.mubr.msk.f32.vlgmr.msra.gmra.mrb[18].mxu0 %vm194_vm3, %v1744_v56 }
0x23fc   :  { %2395 = vmatprep.mubr.msk.f32.mxu0 %vm2751_vm0, %v2752_v1  ;;  %2508 = vmatpush3.bf16.msra.mxu0 %v2507_v30 }
0x23fd   :  { %2509 = vmatprep.subr.bf16.mxu0 %v2750_v0 }
0x2400   :  { %2511 = vmatpush3.bf16.msra.mxu0 %v2510_v32 }
0x24ce   :  { %v1813_v58 = vpop.f32.mrb[18].mxu0 }
0x24cf   :  { %v1817_v59 = vadd.f32 %v1813_v58, %v1741_v57  ;;  %v2375_v8 = vpop.f32.mrb[19].mxu0 }
0x24d1   :  { %2635 = vtanh.f32 %v1817_v59  ;;  %v2083_v61 = vmul.f32 -1.442695, %v1817_v59 }
0x24d3   :  { %2637 = vpow2.f32 %v2083_v61 }
0x24db   :  { %v2636_v60 = vpop.eup %2635 }
0x24dc   :  { %1827 = vrot.lane.b32.xlu0 %v2636_v60, %s2753_s15 }
0x24dd   :  { %v2638_v62 = vpop.eup %2637 }
0x24de   :  { %v1821_v63 = vadd.f32 1.0, %v2638_v62 }
0x24e0   :  { %2639 = vrcp.f32 %v1821_v63 }
0x24ea   :  { %v2640_v12 = vpop.eup %2639 }
0x24eb   :  { %v1825_v4 = vmul.f32 %v2640_v12, %v1734_v52 }
0x254e   :  { %v1828_v2 = vpop.permute.xlu0 %1827 }
0x254f   :  { %v1830_v3 = vmul.f32 %v2640_v12, %v1828_v2 }
0x2551   :  { %1832 = vrot.lane.b32.xlu1 %v1830_v3, %s2754_s3 }
0x25c3   :  { %v1833_v1 = vpop.permute.xlu1 %1832 }
0x25c4   :  { %v1835_v5 = vadd.f32 %v1833_v1, %v1825_v4 }
0x25c6   :  { %2641 = vtanh.f32 %v1835_v5 }
0x25d0   :  { %v2642_v6 = vpop.eup %2641 }
0x25d1   :  { %1838 = vrot.lane.b32.xlu0 %v2642_v6, %s2753_s15 }
0x2643   :  { %v1839_v7 = vpop.permute.xlu0 %1838 }
0x2644   :  { %v1841_v9 = vmul.f32 %v2640_v12, %v1839_v7 }
0x2646   :  { %1844 = vrot.lane.b32.xlu1 %v1841_v9, %s2754_s3 }
0x26b8   :  { %v1845_v10 = vpop.permute.xlu1 %1844 }
0x26b9   :  { %2385 = vmatmul.mubr.msk.f32.vlgmr.msra.gmra.mrb[18].mxu1 %vm194_vm3, %v1845_v10 }
0x278c   :  { %v1914_v13 = vpop.f32.mrb[18].mxu1 }
0x278d   :  { %v1918_v14 = vadd.f32 %v1914_v13, %v1842_v11  ;;  %v2386_v15 = vpop.f32.mrb[19].mxu1 }
0x278f   :  { %2643 = vtanh.f32 %v1918_v14  ;;  %v2085_v17 = vmul.f32 -1.442695, %v1918_v14 }
0x2791   :  { %2645 = vpow2.f32 %v2085_v17 }
0x2799   :  { %v2644_v16 = vpop.eup %2643 }
0x279a   :  { %1928 = vrot.lane.b32.xlu0 %v2644_v16, %s2753_s15 }
0x279b   :  { %v2646_v18 = vpop.eup %2645 }
0x279c   :  { %v1922_v19 = vadd.f32 1.0, %v2646_v18 }
0x279e   :  { %2647 = vrcp.f32 %v1922_v19 }
0x27a8   :  { %v2648_v20 = vpop.eup %2647 }
0x27a9   :  { %v1926_v24 = vmul.f32 %v2648_v20, %v1835_v5 }
0x280c   :  { %v1929_v21 = vpop.permute.xlu0 %1928 }
0x280d   :  { %v1931_v22 = vmul.f32 %v2648_v20, %v1929_v21 }
0x280f   :  { %1933 = vrot.lane.b32.xlu1 %v1931_v22, %s2754_s3 }
0x2881   :  { %v1934_v25 = vpop.permute.xlu1 %1933 }
0x2882   :  { %v1936_v26 = vadd.f32 %v1934_v25, %v1926_v24 }
0x2884   :  { %2649 = vtanh.f32 %v1936_v26 }
0x288e   :  { %v2650_v33 = vpop.eup %2649 }
0x288f   :  { %1939 = vrot.lane.b32.xlu0 %v2650_v33, %s2753_s15 }
0x2901   :  { %v1940_v34 = vpop.permute.xlu0 %1939 }
0x2902   :  { %v1942_v35 = vmul.f32 %v2648_v20, %v1940_v34 }
0x2904   :  { %1955 = vrot.lane.b32.xlu1 %v1942_v35, %s2754_s3 }
0x2976   :  { %v1956_v36 = vpop.permute.xlu1 %1955 }
0x2977   :  { %2396 = vmatmul.mubr.msk.f32.vlgmr.msra.gmra.mrb[20].mxu0 %vm194_vm3, %v1956_v36 }
0x2a4a   :  { %v2025_v38 = vpop.f32.mrb[20].mxu0 }
0x2a4b   :  { %v2026_v23 = vadd.f32 %v2086_v37, %v2025_v38  ;;  %v2397_v0 = vpop.f32.mrb[21].mxu0 }
0x2a4d   :  { %2029 = vst [vmem:[#allocation10] sm:$0xf] %v2026_v23 }
0x2a4e   :  { %2728 = shalt.err (!%p2725_p0)
}
0x2a4f   :  { %s2729_s11 = scalar_lea.hbm %s3139_s9, 64 }
0x2a50   :  { %p2730_p1 = scmp.ne.s32.totalorder %s3139_s9, %s2729_s11  ;;  %p2733_p2 = scmp.lt.u32.totalorder %s2729_s11, %s3139_s9 }
0x2a52   :  { %p2735_p3 = pnand %p2733_p2, %p2730_p1 }
0x2a54   :  { %2738 = shalt.err (!%p2735_p3)
}
0x2a55   :  { %2039 = dma.vmem_to_hbm [thread:$0]  %s2037_s22, 64, %s3139_s9, [#allocation6]  }
0x2a56   :  { %2743 = dma.done.wait [#allocation6], 64  }
0x2a57   :  { %2744 = vsyncadd [#allocation6], 4294967232 }
0x2a58   :  { %2043 = vsyncpa [#allocation5], 1 }
0x2a59   :  { %2044 = vsyncpa [#allocation8], 1 }
0x2a5a   :  { %2045 = vsyncpa [#allocation6], 1 }

</bundles_post_ra>
